<compile_context>
chip_gen: v6e
topology: v6e:2x2x1
jax: 0.10.0
libtpu: 0.0.40
codegen_flags: <defaults>
</compile_context>

<pallas_src>
import functools

import jax
import jax.numpy as jnp
from jax import lax
from jax.experimental import pallas as pl
from jax.experimental.pallas import tpu as pltpu

PACK = 128  # lane-dense packed width for fused head weights and the output


# ----------------------------- kernels --------------------------------------

def _encode_and_heads(obs_ref, we_ref, be_ref, w1_ref, b1_ref, w2_ref, b2_ref):
    """Encoder + fused actor/critic heads. Returns (hidden, packed_logits)."""
    # TODO(synk): MettaAgent.encode_observations is external/opaque; it is
    # approximated by a single Linear+ReLU over the flattened grid_obs
    # (the global_vars fed by the wrapper are all-zero anyway).
    x = obs_ref[...].astype(jnp.float32)            # int8 obs cast in-kernel
    h = jnp.dot(x.astype(jnp.bfloat16), we_ref[...],
                preferred_element_type=jnp.float32) + be_ref[...]
    h = jnp.maximum(h, 0.0)                         # (bm, H)

    # heads: [critic | atn_type L1 | atn_param L1] in one lane-dense matmul,
    # both second layers in one block-diagonal (PACK, PACK) matmul.
    z1 = jnp.dot(h, w1_ref[...], preferred_element_type=jnp.float32) + b1_ref[...]
    a1 = jnp.maximum(z1, 0.0)                       # ReLU (critic lane unused below)
    z2 = jnp.dot(a1, w2_ref[...], preferred_element_type=jnp.float32) + b2_ref[...]

    lane = lax.broadcasted_iota(jnp.int32, z2.shape, 1)
    packed = z2 + jnp.where(lane == 0, z1, 0.0)     # lane 0 <- un-ReLU'd critic value
    return h, packed


def _fused_kernel(obs_ref, we_ref, be_ref, w1_ref, b1_ref, w2_ref, b2_ref, out_ref):
    _, packed = _encode_and_heads(obs_ref, we_ref, be_ref,
                                  w1_ref, b1_ref, w2_ref, b2_ref)
    out_ref[...] = packed


def _fused_e3b_kernel(obs_ref, we_ref, be_ref, w1_ref, b1_ref, w2_ref, b2_ref,
                      e_ref, out_ref, e_out_ref, *, b_lane):
    h, packed = _encode_and_heads(obs_ref, we_ref, be_ref,
                                  w1_ref, b1_ref, w2_ref, b2_ref)
    bm, H = h.shape
    BH = e_ref.shape[0]                             # == bm * H
    E2 = e_ref[...]                                 # row b*H+i  <->  e3b[b, i, :]

    # --- iota-built selection matrices (no integer div/mod on vectors) ------
    # Sf[r, b]  = 1.0 iff row r belongs to batch b  (r in [b*H, (b+1)*H))
    r_sb = lax.broadcasted_iota(jnp.int32, (BH, bm), 0)
    b_sb = lax.broadcasted_iota(jnp.int32, (BH, bm), 1)
    d = r_sb - H * b_sb
    Sf = ((d >= 0) & (d < H)).astype(jnp.float32)                    # (BH, bm)
    # Sft[b, r] = Sf[r, b]
    b_bs = lax.broadcasted_iota(jnp.int32, (bm, BH), 0)
    r_bs = lax.broadcasted_iota(jnp.int32, (bm, BH), 1)
    d2 = r_bs - H * b_bs
    Sft = ((d2 >= 0) & (d2 < H)).astype(jnp.float32)                 # (bm, BH)
    # Mdiag[r, k] = (k == r mod H), via exact float arithmetic.
    b_of_r = jnp.sum(Sf * b_sb.astype(jnp.float32), axis=1, keepdims=True)  # r // H
    r_col = lax.broadcasted_iota(jnp.int32, (BH, 1), 0).astype(jnp.float32)
    rmod = r_col - H * b_of_r                                        # r mod H
    lane_h = lax.broadcasted_iota(jnp.int32, (BH, H), 1).astype(jnp.float32)
    Mdiag = (lane_h == rmod).astype(jnp.float32)                     # (BH, H)

    # --- e3b update: u = phi @ E ; b = u . phi ; E <- 0.99 E - u^T u/(1+b) ---
    Hrep = jnp.dot(Sf, h, preferred_element_type=jnp.float32)        # row b*H+i -> phi[b, :]
    phicol = jnp.sum(Hrep * Mdiag, axis=1, keepdims=True)            # (BH, 1): phi[b, i]
    u = jnp.dot(Sft, phicol * E2, preferred_element_type=jnp.float32)  # (bm, H)
    bb = jnp.sum(u * h, axis=1, keepdims=True)                       # (bm, 1)
    v = u * pl.reciprocal(1.0 + bb, approx=True)                     # u / (1 + b)  (EUP)
    Urep = jnp.dot(Sf, u, preferred_element_type=jnp.float32)        # (BH, H)
    Vrep = jnp.dot(Sf, v, preferred_element_type=jnp.float32)        # (BH, H)
    u_col = jnp.sum(Urep * Mdiag, axis=1, keepdims=True)             # (BH, 1): u[b, i]
    e_out_ref[...] = 0.99 * E2 - u_col * Vrep                        # in-place (aliased)

    lane = lax.broadcasted_iota(jnp.int32, packed.shape, 1)
    out_ref[...] = jnp.where(lane == b_lane, bb, packed)             # lane b_lane <- b


# ----------------------------- wrappers --------------------------------------

def pack_params(p, n_type, n_param):
    """One-time packing of torch-style weights into the fused/lane-dense layout."""
    H = p['w_enc'].shape[1]
    A = p['w_t1'].shape[1]
    assert 1 + 2 * A <= PACK, "actor hidden too wide for packed layout"
    assert 1 + n_type + n_param + 1 <= PACK, "action space too wide for packed layout"

    w_h1 = jnp.zeros((H, PACK), jnp.float32)
    w_h1 = w_h1.at[:, 0:1].set(p['w_critic'])
    w_h1 = w_h1.at[:, 1:1 + A].set(p['w_t1'])
    w_h1 = w_h1.at[:, 1 + A:1 + 2 * A].set(p['w_p1'])
    b_h1 = jnp.zeros((1, PACK), jnp.float32)
    b_h1 = b_h1.at[:, 0:1].set(p['b_critic'])
    b_h1 = b_h1.at[:, 1:1 + A].set(p['b_t1'])
    b_h1 = b_h1.at[:, 1 + A:1 + 2 * A].set(p['b_p1'])

    w_h2 = jnp.zeros((PACK, PACK), jnp.float32)
    w_h2 = w_h2.at[1:1 + A, 1:1 + n_type].set(p['w_t2'])
    w_h2 = w_h2.at[1 + A:1 + 2 * A, 1 + n_type:1 + n_type + n_param].set(p['w_p2'])
    b_h2 = jnp.zeros((1, PACK), jnp.float32)
    b_h2 = b_h2.at[:, 1:1 + n_type].set(p['b_t2'])
    b_h2 = b_h2.at[:, 1 + n_type:1 + n_type + n_param].set(p['b_p2'])

    return {
        'w_enc': p['w_enc'].astype(jnp.bfloat16),   # halves the dominant weight DMA
        'b_enc': p['b_enc'],
        'w_h1': w_h1, 'b_h1': b_h1,
        'w_h2': w_h2, 'b_h2': b_h2,
    }


def puffer_agent_forward(obs, pp, n_type, n_param, e3b=None):
    """Mirrors PufferAgentWrapper.forward: returns (action, value, e3b, b)."""
    B = obs.shape[0]
    x = obs.reshape(B, -1)                          # keep native int8; cast in-kernel
    D = x.shape[1]
    H = pp['w_enc'].shape[1]
    b_lane = 1 + n_type + n_param

    # batch tile: small for the e3b path (selector matrices are O(bm^2 * H)),
    # larger otherwise.  Re-derive against 32 MiB scoped VMEM for v7x if grown.
    bm = min(B, 32) if e3b is not None else min(B, 512)
    grid = (pl.cdiv(B, bm),)

    weight_specs = [
        pl.BlockSpec((D, H), lambda i: (0, 0)),
        pl.BlockSpec((1, H), lambda i: (0, 0)),
        pl.BlockSpec((H, PACK), lambda i: (0, 0)),
        pl.BlockSpec((1, PACK), lambda i: (0, 0)),
        pl.BlockSpec((PACK, PACK), lambda i: (0, 0)),
        pl.BlockSpec((1, PACK), lambda i: (0, 0)),
    ]
    obs_spec = pl.BlockSpec((bm, D), lambda i: (i, 0))
    out_spec = pl.BlockSpec((bm, PACK), lambda i: (i, 0))
    cp = pltpu.CompilerParams(dimension_semantics=("parallel",))

    if e3b is None:
        packed = pl.pallas_call(
            _fused_kernel,
            out_shape=jax.ShapeDtypeStruct((B, PACK), jnp.float32),
            grid=grid,
            in_specs=[obs_spec] + weight_specs,
            out_specs=out_spec,
            compiler_params=cp,
        )(x, pp['w_enc'], pp['b_enc'], pp['w_h1'], pp['b_h1'], pp['w_h2'], pp['b_h2'])
        new_e3b, b = None, None
    else:
        e2 = e3b.reshape(B * H, H)                  # 2-D carry: row b*H+i <-> e3b[b,i,:]
        e2_spec = pl.BlockSpec((bm * H, H), lambda i: (i, 0))
        packed, new_e2 = pl.pallas_call(
            functools.partial(_fused_e3b_kernel, b_lane=b_lane),
            out_shape=(jax.ShapeDtypeStruct((B, PACK), jnp.float32),
                       jax.ShapeDtypeStruct((B * H, H), jnp.float32)),
            grid=grid,
            in_specs=[obs_spec] + weight_specs + [e2_spec],
            out_specs=(out_spec, e2_spec),
            input_output_aliases={7: 1},            # update e3b covariance in place
            compiler_params=cp,
        )(x, pp['w_enc'], pp['b_enc'], pp['w_h1'], pp['b_h1'], pp['w_h2'], pp['b_h2'], e2)
        new_e3b = new_e2.reshape(B, H, H)
        b = packed[:, b_lane]                       # (B,) even when B == 1

    value = packed[:, 0:1]
    atn_type = packed[:, 1:1 + n_type]
    atn_param = packed[:, 1 + n_type:1 + n_type + n_param]
    action = [atn_type, atn_param]                  # MultiDiscrete (nvec of len 2)
    return action, value, new_e3b, b


# ----------------------------- setup / main -----------------------------------

def init_params(key, in_dim, hidden, actor_hidden, n_type, n_param):
    ks = jax.random.split(key, 6)
    s = 0.05
    return {
        'w_enc':    s * jax.random.normal(ks[0], (in_dim, hidden), jnp.float32),
        'b_enc':    jnp.zeros((1, hidden), jnp.float32),
        'w_critic': s * jax.random.normal(ks[1], (hidden, 1), jnp.float32),
        'b_critic': jnp.zeros((1, 1), jnp.float32),
        'w_t1':     s * jax.random.normal(ks[2], (hidden, actor_hidden), jnp.float32),
        'b_t1':     jnp.zeros((1, actor_hidden), jnp.float32),
        'w_t2':     s * jax.random.normal(ks[3], (actor_hidden, n_type), jnp.float32),
        'b_t2':     jnp.zeros((1, n_type), jnp.float32),
        'w_p1':     s * jax.random.normal(ks[4], (hidden, actor_hidden), jnp.float32),
        'b_p1':     jnp.zeros((1, actor_hidden), jnp.float32),
        'w_p2':     s * jax.random.normal(ks[5], (actor_hidden, n_param), jnp.float32),
        'b_p2':     jnp.zeros((1, n_param), jnp.float32),
    }


if __name__ == "__main__":
    B, C, S = 8, 4, 16            # small NCHW observation
    HIDDEN = 32                   # agent.decoder_out_size()
    ACTOR_HIDDEN = 32             # actor_hidden_sizes = [32]
    N_TYPE, N_PARAM = 9, 10       # env.single_action_space.nvec == (9, 10)

    key = jax.random.PRNGKey(0)
    k_obs, k_params = jax.random.split(key)

    # grid observations kept in a native low-precision dtype (cast in-kernel)
    obs = jax.random.randint(k_obs, (B, C, S, S), 0, 6, dtype=jnp.int8)
    e3b0 = jnp.tile(jnp.eye(HIDDEN, dtype=jnp.float32)[None] * 10.0, (B, 1, 1))
    params = init_params(k_params, C * S * S, HIDDEN, ACTOR_HIDDEN, N_TYPE, N_PARAM)
    packed_params = pack_params(params, N_TYPE, N_PARAM)

    # pure-JAX reference of the torch forward (f32 weights, exact math)
    xf = obs.reshape(B, -1).astype(jnp.float32)
    h_ref = jnp.maximum(xf @ params['w_enc'] + params['b_enc'], 0.0)
    value_ref = h_ref @ params['w_critic'] + params['b_critic']
    atype_ref = (jnp.maximum(h_ref @ params['w_t1'] + params['b_t1'], 0.0)
                 @ params['w_t2'] + params['b_t2'])
    aparam_ref = (jnp.maximum(h_ref @ params['w_p1'] + params['b_p1'], 0.0)
                  @ params['w_p2'] + params['b_p2'])
    u_ref = jnp.einsum('bh,bhk->bk', h_ref, e3b0)
    b_ref = jnp.sum(u_ref * h_ref, axis=-1)
    e3b_ref = (0.99 * e3b0
               - (u_ref[:, :, None] * u_ref[:, None, :]) / (1.0 + b_ref)[:, None, None])

    # e3b path
    action, value, new_e3b, b = puffer_agent_forward(
        obs, packed_params, N_TYPE, N_PARAM, e3b=e3b0)
    jax.block_until_ready((action[0], action[1], value, new_e3b, b))

    assert action[0].shape == (B, N_TYPE)
    assert action[1].shape == (B, N_PARAM)
    assert value.shape == (B, 1)
    assert new_e3b.shape == (B, HIDDEN, HIDDEN)
    assert b.shape == (B,)

    # no-e3b path
    action2, value2, e3b2, b2 = puffer_agent_forward(
        obs, packed_params, N_TYPE, N_PARAM, e3b=None)
    jax.block_until_ready((action2[0], action2[1], value2))
    assert e3b2 is None and b2 is None
    assert action2[0].shape == (B, N_TYPE) and value2.shape == (B, 1)

    # numerical sanity check (bf16 encoder weights + approx reciprocal -> loose tol)
    assert jnp.allclose(value, value_ref, rtol=5e-2, atol=5e-2)
    assert jnp.allclose(action[0], atype_ref, rtol=5e-2, atol=5e-2)
    assert jnp.allclose(action[1], aparam_ref, rtol=5e-2, atol=5e-2)
    assert jnp.allclose(b, b_ref, rtol=5e-2, atol=5e-2)
    assert jnp.allclose(new_e3b, e3b_ref, rtol=5e-2, atol=1e-1)

    print("KERNEL_OK")
</pallas_src>

<mosaic_0001>
module attributes {stable_mosaic.version = 11 : i64} {
  func.func @_fused_e3b_kernel(%arg0: i32, %arg1: memref<8x1024xi8, #tpu.memory_space<vmem>>, %arg2: memref<1024x32xbf16, #tpu.memory_space<vmem>>, %arg3: memref<1x32xf32, #tpu.memory_space<vmem>>, %arg4: memref<32x128xf32, #tpu.memory_space<vmem>>, %arg5: memref<1x128xf32, #tpu.memory_space<vmem>>, %arg6: memref<128x128xf32, #tpu.memory_space<vmem>>, %arg7: memref<1x128xf32, #tpu.memory_space<vmem>>, %arg8: memref<256x32xf32, #tpu.memory_space<vmem>>, %arg9: memref<8x128xf32, #tpu.memory_space<vmem>>, %arg10: memref<256x32xf32, #tpu.memory_space<vmem>>) attributes {dimension_semantics = [#tpu.dimension_semantics<parallel>], iteration_bounds = array<i64: 1>, scalar_prefetch = 0 : i64, scratch_operands = 0 : i64, tpu.core_type = #tpu.core_type<tc>, window_params = [{transform_indices = @transform_0, window_bounds = array<i64: 8, 1024>}, {pipeline_mode = #tpu.pipeline_mode<synchronous>, transform_indices = @transform_1, window_bounds = array<i64: 1024, 32>}, {pipeline_mode = #tpu.pipeline_mode<synchronous>, transform_indices = @transform_2, window_bounds = array<i64: 1, 32>}, {pipeline_mode = #tpu.pipeline_mode<synchronous>, transform_indices = @transform_3, window_bounds = array<i64: 32, 128>}, {pipeline_mode = #tpu.pipeline_mode<synchronous>, transform_indices = @transform_4, window_bounds = array<i64: 1, 128>}, {pipeline_mode = #tpu.pipeline_mode<synchronous>, transform_indices = @transform_5, window_bounds = array<i64: 128, 128>}, {pipeline_mode = #tpu.pipeline_mode<synchronous>, transform_indices = @transform_6, window_bounds = array<i64: 1, 128>}, {transform_indices = @transform_7, window_bounds = array<i64: 256, 32>}, {transform_indices = @transform_8, window_bounds = array<i64: 8, 128>}, {transform_indices = @transform_9, window_bounds = array<i64: 256, 32>}]} {
    %c0 = arith.constant 0 : index
    %c0_0 = arith.constant 0 : index
    %0 = vector.load %arg1[%c0, %c0_0] : memref<8x1024xi8, #tpu.memory_space<vmem>>, vector<8x1024xi8>
    %1 = arith.sitofp %0 : vector<8x1024xi8> to vector<8x1024xf32>
    %2 = arith.truncf %1 : vector<8x1024xf32> to vector<8x1024xbf16>
    %c0_1 = arith.constant 0 : index
    %c0_2 = arith.constant 0 : index
    %3 = vector.load %arg2[%c0_1, %c0_2] : memref<1024x32xbf16, #tpu.memory_space<vmem>>, vector<1024x32xbf16>
    %cst = arith.constant dense<0.000000e+00> : vector<8x32xf32>
    %4 = tpu.matmul %2, %3, %cst {dimension_numbers = #tpu.dot_dimension_numbers<[1], [0], [0], [1], [0, 0, 1, 1], [], []>} : vector<8x1024xbf16>, vector<1024x32xbf16>, vector<8x32xf32> -> vector<8x32xf32>
    %c0_3 = arith.constant 0 : index
    %c0_4 = arith.constant 0 : index
    %5 = vector.load %arg3[%c0_3, %c0_4] : memref<1x32xf32, #tpu.memory_space<vmem>>, vector<1x32xf32>
    %6 = vector.broadcast %5 : vector<1x32xf32> to vector<8x32xf32>
    %7 = arith.addf %4, %6 : vector<8x32xf32>
    %cst_5 = arith.constant 0.000000e+00 : f32
    %8 = vector.broadcast %cst_5 : f32 to vector<8x32xf32>
    %9 = arith.maximumf %7, %8 : vector<8x32xf32>
    %c0_6 = arith.constant 0 : index
    %c0_7 = arith.constant 0 : index
    %10 = vector.load %arg4[%c0_6, %c0_7] : memref<32x128xf32, #tpu.memory_space<vmem>>, vector<32x128xf32>
    %cst_8 = arith.constant dense<0.000000e+00> : vector<8x128xf32>
    %11 = tpu.matmul %9, %10, %cst_8 {dimension_numbers = #tpu.dot_dimension_numbers<[1], [0], [0], [1], [0, 0, 1, 1], [], []>} : vector<8x32xf32>, vector<32x128xf32>, vector<8x128xf32> -> vector<8x128xf32>
    %c0_9 = arith.constant 0 : index
    %c0_10 = arith.constant 0 : index
    %12 = vector.load %arg5[%c0_9, %c0_10] : memref<1x128xf32, #tpu.memory_space<vmem>>, vector<1x128xf32>
    %13 = vector.broadcast %12 : vector<1x128xf32> to vector<8x128xf32>
    %14 = arith.addf %11, %13 : vector<8x128xf32>
    %cst_11 = arith.constant 0.000000e+00 : f32
    %15 = vector.broadcast %cst_11 : f32 to vector<8x128xf32>
    %16 = arith.maximumf %14, %15 : vector<8x128xf32>
    %c0_12 = arith.constant 0 : index
    %c0_13 = arith.constant 0 : index
    %17 = vector.load %arg6[%c0_12, %c0_13] : memref<128x128xf32, #tpu.memory_space<vmem>>, vector<128x128xf32>
    %cst_14 = arith.constant dense<0.000000e+00> : vector<8x128xf32>
    %18 = tpu.matmul %16, %17, %cst_14 {dimension_numbers = #tpu.dot_dimension_numbers<[1], [0], [0], [1], [0, 0, 1, 1], [], []>} : vector<8x128xf32>, vector<128x128xf32>, vector<8x128xf32> -> vector<8x128xf32>
    %c0_15 = arith.constant 0 : index
    %c0_16 = arith.constant 0 : index
    %19 = vector.load %arg7[%c0_15, %c0_16] : memref<1x128xf32, #tpu.memory_space<vmem>>, vector<1x128xf32>
    %20 = vector.broadcast %19 : vector<1x128xf32> to vector<8x128xf32>
    %21 = arith.addf %18, %20 : vector<8x128xf32>
    %22 = tpu.iota {dimensions = array<i32: 1>} : vector<8x128xi32>
    %c0_i32 = arith.constant 0 : i32
    %23 = vector.broadcast %c0_i32 : i32 to vector<8x128xi32>
    %24 = arith.cmpi eq, %22, %23 : vector<8x128xi32>
    %cst_17 = arith.constant 0.000000e+00 : f32
    %25 = vector.broadcast %cst_17 : f32 to vector<8x128xf32>
    %26 = arith.select %24, %14, %25 : vector<8x128xi1>, vector<8x128xf32>
    %27 = arith.addf %21, %26 : vector<8x128xf32>
    %c0_18 = arith.constant 0 : index
    %c0_19 = arith.constant 0 : index
    %28 = vector.load %arg8[%c0_18, %c0_19] : memref<256x32xf32, #tpu.memory_space<vmem>>, vector<256x32xf32>
    %29 = tpu.iota {dimensions = array<i32: 0>} : vector<256x8xi32>
    %30 = tpu.iota {dimensions = array<i32: 1>} : vector<256x8xi32>
    %c32_i32 = arith.constant 32 : i32
    %31 = vector.broadcast %c32_i32 : i32 to vector<256x8xi32>
    %32 = arith.muli %31, %30 : vector<256x8xi32>
    %33 = arith.subi %29, %32 : vector<256x8xi32>
    %c0_i32_20 = arith.constant 0 : i32
    %34 = vector.broadcast %c0_i32_20 : i32 to vector<256x8xi32>
    %35 = arith.cmpi sge, %33, %34 : vector<256x8xi32>
    %c32_i32_21 = arith.constant 32 : i32
    %36 = vector.broadcast %c32_i32_21 : i32 to vector<256x8xi32>
    %37 = arith.cmpi slt, %33, %36 : vector<256x8xi32>
    %38 = arith.andi %35, %37 : vector<256x8xi1>
    %39 = arith.extui %38 : vector<256x8xi1> to vector<256x8xi32>
    %40 = arith.sitofp %39 : vector<256x8xi32> to vector<256x8xf32>
    %41 = tpu.iota {dimensions = array<i32: 0>} : vector<8x256xi32>
    %42 = tpu.iota {dimensions = array<i32: 1>} : vector<8x256xi32>
    %c32_i32_22 = arith.constant 32 : i32
    %43 = vector.broadcast %c32_i32_22 : i32 to vector<8x256xi32>
    %44 = arith.muli %43, %41 : vector<8x256xi32>
    %45 = arith.subi %42, %44 : vector<8x256xi32>
    %c0_i32_23 = arith.constant 0 : i32
    %46 = vector.broadcast %c0_i32_23 : i32 to vector<8x256xi32>
    %47 = arith.cmpi sge, %45, %46 : vector<8x256xi32>
    %c32_i32_24 = arith.constant 32 : i32
    %48 = vector.broadcast %c32_i32_24 : i32 to vector<8x256xi32>
    %49 = arith.cmpi slt, %45, %48 : vector<8x256xi32>
    %50 = arith.andi %47, %49 : vector<8x256xi1>
    %51 = arith.extui %50 : vector<8x256xi1> to vector<8x256xi32>
    %52 = arith.sitofp %51 : vector<8x256xi32> to vector<8x256xf32>
    %53 = arith.sitofp %30 : vector<256x8xi32> to vector<256x8xf32>
    %54 = arith.mulf %40, %53 : vector<256x8xf32>
    %cst_25 = arith.constant dense<0.000000e+00> : vector<256xf32>
    %55 = vector.multi_reduction <add>, %54, %cst_25 [1] : vector<256x8xf32> to vector<256xf32>
    %56 = vector.shape_cast %55 : vector<256xf32> to vector<256x1xf32>
    %57 = tpu.iota {dimensions = array<i32: 0>} : vector<256x1xi32>
    %58 = arith.sitofp %57 : vector<256x1xi32> to vector<256x1xf32>
    %cst_26 = arith.constant 3.200000e+01 : f32
    %59 = vector.broadcast %cst_26 : f32 to vector<256x1xf32>
    %60 = arith.mulf %59, %56 : vector<256x1xf32>
    %61 = arith.subf %58, %60 : vector<256x1xf32>
    %62 = tpu.iota {dimensions = array<i32: 1>} : vector<256x32xi32>
    %63 = arith.sitofp %62 : vector<256x32xi32> to vector<256x32xf32>
    %64 = vector.broadcast %61 : vector<256x1xf32> to vector<256x32xf32>
    %65 = arith.cmpf oeq, %63, %64 : vector<256x32xf32>
    %66 = arith.extui %65 : vector<256x32xi1> to vector<256x32xi32>
    %67 = arith.sitofp %66 : vector<256x32xi32> to vector<256x32xf32>
    %cst_27 = arith.constant dense<0.000000e+00> : vector<256x32xf32>
    %68 = tpu.matmul %40, %9, %cst_27 {dimension_numbers = #tpu.dot_dimension_numbers<[1], [0], [0], [1], [0, 0, 1, 1], [], []>} : vector<256x8xf32>, vector<8x32xf32>, vector<256x32xf32> -> vector<256x32xf32>
    %69 = arith.mulf %68, %67 : vector<256x32xf32>
    %cst_28 = arith.constant dense<0.000000e+00> : vector<256xf32>
    %70 = vector.multi_reduction <add>, %69, %cst_28 [1] : vector<256x32xf32> to vector<256xf32>
    %71 = vector.shape_cast %70 : vector<256xf32> to vector<256x1xf32>
    %72 = vector.broadcast %71 : vector<256x1xf32> to vector<256x32xf32>
    %73 = arith.mulf %72, %28 : vector<256x32xf32>
    %cst_29 = arith.constant dense<0.000000e+00> : vector<8x32xf32>
    %74 = tpu.matmul %52, %73, %cst_29 {dimension_numbers = #tpu.dot_dimension_numbers<[1], [0], [0], [1], [0, 0, 1, 1], [], []>} : vector<8x256xf32>, vector<256x32xf32>, vector<8x32xf32> -> vector<8x32xf32>
    %75 = arith.mulf %74, %9 : vector<8x32xf32>
    %cst_30 = arith.constant dense<0.000000e+00> : vector<8xf32>
    %76 = vector.multi_reduction <add>, %75, %cst_30 [1] : vector<8x32xf32> to vector<8xf32>
    %77 = vector.shape_cast %76 : vector<8xf32> to vector<8x1xf32>
    %cst_31 = arith.constant 1.000000e+00 : f32
    %78 = vector.broadcast %cst_31 : f32 to vector<8x1xf32>
    %79 = arith.addf %78, %77 : vector<8x1xf32>
    %80 = tpu.reciprocal %79 {approx = true} : vector<8x1xf32> -> vector<8x1xf32>
    %81 = vector.broadcast %80 : vector<8x1xf32> to vector<8x32xf32>
    %82 = arith.mulf %74, %81 : vector<8x32xf32>
    %cst_32 = arith.constant dense<0.000000e+00> : vector<256x32xf32>
    %83 = tpu.matmul %40, %74, %cst_32 {dimension_numbers = #tpu.dot_dimension_numbers<[1], [0], [0], [1], [0, 0, 1, 1], [], []>} : vector<256x8xf32>, vector<8x32xf32>, vector<256x32xf32> -> vector<256x32xf32>
    %cst_33 = arith.constant dense<0.000000e+00> : vector<256x32xf32>
    %84 = tpu.matmul %40, %82, %cst_33 {dimension_numbers = #tpu.dot_dimension_numbers<[1], [0], [0], [1], [0, 0, 1, 1], [], []>} : vector<256x8xf32>, vector<8x32xf32>, vector<256x32xf32> -> vector<256x32xf32>
    %85 = arith.mulf %83, %67 : vector<256x32xf32>
    %cst_34 = arith.constant dense<0.000000e+00> : vector<256xf32>
    %86 = vector.multi_reduction <add>, %85, %cst_34 [1] : vector<256x32xf32> to vector<256xf32>
    %87 = vector.shape_cast %86 : vector<256xf32> to vector<256x1xf32>
    %cst_35 = arith.constant 9.900000e-01 : f32
    %88 = vector.broadcast %cst_35 : f32 to vector<256x32xf32>
    %89 = arith.mulf %88, %28 : vector<256x32xf32>
    %90 = vector.broadcast %87 : vector<256x1xf32> to vector<256x32xf32>
    %91 = arith.mulf %90, %84 : vector<256x32xf32>
    %92 = arith.subf %89, %91 : vector<256x32xf32>
    %c0_36 = arith.constant 0 : index
    %c0_37 = arith.constant 0 : index
    %93 = vector.load %arg10[%c0_36, %c0_37] : memref<256x32xf32, #tpu.memory_space<vmem>>, vector<256x32xf32>
    tpu.vector_store %arg10[%c0_36, %c0_37], %92 {strides = array<i32>} : memref<256x32xf32, #tpu.memory_space<vmem>>, vector<256x32xf32>,
    %94 = tpu.iota {dimensions = array<i32: 1>} : vector<8x128xi32>
    %c20_i32 = arith.constant 20 : i32
    %95 = vector.broadcast %c20_i32 : i32 to vector<8x128xi32>
    %96 = arith.cmpi eq, %94, %95 : vector<8x128xi32>
    %97 = vector.shape_cast %77 : vector<8x1xf32> to vector<8x1xf32>
    %98 = vector.broadcast %97 : vector<8x1xf32> to vector<8x128xf32>
    %99 = arith.select %96, %98, %27 : vector<8x128xi1>, vector<8x128xf32>
    %c0_38 = arith.constant 0 : index
    %c0_39 = arith.constant 0 : index
    %100 = vector.load %arg9[%c0_38, %c0_39] : memref<8x128xf32, #tpu.memory_space<vmem>>, vector<8x128xf32>
    tpu.vector_store %arg9[%c0_38, %c0_39], %99 {strides = array<i32>} : memref<8x128xf32, #tpu.memory_space<vmem>>, vector<8x128xf32>,
    return
  }
  func.func @transform_0(%arg0: i32) -> (i32, i32) {
    %c0_i32 = arith.constant 0 : i32
    %c0_i32_0 = arith.constant 0 : i32
    return %arg0, %c0_i32 : i32, i32
  }
  func.func @transform_1(%arg0: i32) -> (i32, i32) {
    %c0_i32 = arith.constant 0 : i32
    %c0_i32_0 = arith.constant 0 : i32
    %c0_i32_1 = arith.constant 0 : i32
    return %c0_i32, %c0_i32_0 : i32, i32
  }
  func.func @transform_2(%arg0: i32) -> (i32, i32) {
    %c0_i32 = arith.constant 0 : i32
    %c0_i32_0 = arith.constant 0 : i32
    %c0_i32_1 = arith.constant 0 : i32
    return %c0_i32, %c0_i32_0 : i32, i32
  }
  func.func @transform_3(%arg0: i32) -> (i32, i32) {
    %c0_i32 = arith.constant 0 : i32
    %c0_i32_0 = arith.constant 0 : i32
    %c0_i32_1 = arith.constant 0 : i32
    return %c0_i32, %c0_i32_0 : i32, i32
  }
  func.func @transform_4(%arg0: i32) -> (i32, i32) {
    %c0_i32 = arith.constant 0 : i32
    %c0_i32_0 = arith.constant 0 : i32
    %c0_i32_1 = arith.constant 0 : i32
    return %c0_i32, %c0_i32_0 : i32, i32
  }
  func.func @transform_5(%arg0: i32) -> (i32, i32) {
    %c0_i32 = arith.constant 0 : i32
    %c0_i32_0 = arith.constant 0 : i32
    %c0_i32_1 = arith.constant 0 : i32
    return %c0_i32, %c0_i32_0 : i32, i32
  }
  func.func @transform_6(%arg0: i32) -> (i32, i32) {
    %c0_i32 = arith.constant 0 : i32
    %c0_i32_0 = arith.constant 0 : i32
    %c0_i32_1 = arith.constant 0 : i32
    return %c0_i32, %c0_i32_0 : i32, i32
  }
  func.func @transform_7(%arg0: i32) -> (i32, i32) {
    %c0_i32 = arith.constant 0 : i32
    %c0_i32_0 = arith.constant 0 : i32
    return %arg0, %c0_i32 : i32, i32
  }
  func.func @transform_8(%arg0: i32) -> (i32, i32) {
    %c0_i32 = arith.constant 0 : i32
    %c0_i32_0 = arith.constant 0 : i32
    return %arg0, %c0_i32 : i32, i32
  }
  func.func @transform_9(%arg0: i32) -> (i32, i32) {
    %c0_i32 = arith.constant 0 : i32
    %c0_i32_0 = arith.constant 0 : i32
    return %arg0, %c0_i32 : i32, i32
  }
}

</mosaic_0001>

<bundles_post_ra>
// kernel: tpu_custom_call.1
= control target key start
LH: loop header
LB: loop body
LE: loop exit
PB: predicated region body
PF: predicated region fallthrough
CT: control target
= control target key end

     0   :  { %s5276_s0 = inlined_call_operand.vmem [shape: s8[8,1024], index: 0, kind: input, shape index: {}]   ;;  %s5277_s1 = inlined_call_operand.vmem [shape: bf16[1024,32], index: 1, kind: input, shape index: {}]   ;;  %s5278_s2 = inlined_call_operand.vmem [shape: f32[1,32], index: 2, kind: input, shape index: {}]   ;;  %s5279_s3 = inlined_call_operand.vmem [shape: f32[32,128], index: 3, kind: input, shape index: {}]   ;;  %s5280_s4 = inlined_call_operand.vmem [shape: f32[1,128], index: 4, kind: input, shape index: {}]   ;;  %s5281_s5 = inlined_call_operand.vmem [shape: f32[128,128], index: 5, kind: input, shape index: {}]   ;;  %s5282_s6 = inlined_call_operand.vmem [shape: f32[1,128], index: 6, kind: input, shape index: {}]   ;;  %s5283_s7 = inlined_call_operand.vmem [shape: f32[256,32], index: 7, kind: input, shape index: {}, may-alias: {7,9}]   ;;  %s5284_s8 = inlined_call_operand.hbm [shape: f32[8,128], index: 8, kind: output, shape index: {0}]   ;;  %s5285_s9 = inlined_call_operand.vmem [shape: f32[256,32], index: 9, kind: output, shape index: {1}, may-alias: {7,9}]  }
   0x1   :  { %v3496_v0 = vld [vmem:[%s5277_s1 + $0x78] sm:$0xff]   ;;  %v3500_v4 = vld [vmem:[%s5277_s1 + $0x70] sm:$0xff]   ;;  %v3504_v8 = vld [vmem:[%s5277_s1 + $0x68] sm:$0xff]  }
   0x2   :  { %v3497_v1 = vld [vmem:[%s5277_s1 + $0xf8] sm:$0xff]   ;;  %3050 = vmatprep.subr.bf16.mxu0 %v3496_v0  ;;  %v3501_v5 = vld [vmem:[%s5277_s1 + $0xf0] sm:$0xff]   ;;  %v3505_v9 = vld [vmem:[%s5277_s1 + $0xe8] sm:$0xff]  }
   0x3   :  { %v3498_v2 = vld [vmem:[%s5277_s1 + $0x38] sm:$0xff]   ;;  %3072 = vmatprep.subr.bf16.mxu1 %v3497_v1  ;;  %v3502_v6 = vld [vmem:[%s5277_s1 + $0x30] sm:$0xff]   ;;  %v3506_v10 = vld [vmem:[%s5277_s1 + $0x28] sm:$0xff]  }
   0x4   :  { %v3499_v3 = vld [vmem:[%s5277_s1 + $0xb8] sm:$0xff]   ;;  %3051 = vmatpush3.bf16.msra.mxu0 %v3498_v2  ;;  %v3503_v7 = vld [vmem:[%s5277_s1 + $0xb0] sm:$0xff]   ;;  %v3507_v11 = vld [vmem:[%s5277_s1 + $0xa8] sm:$0xff]  }
   0x5   :  { %3073 = vmatpush3.bf16.msra.mxu1 %v3499_v3  ;;  %3052 = vmatprep.subr.bf16.mxu0 %v3500_v4  ;;  %v3508_v12 = vld [vmem:[%s5277_s1 + $0x60] sm:$0xff]   ;;  %v3512_v16 = vld [vmem:[%s5277_s1 + $0x58] sm:$0xff]   ;;  %v3516_v20 = vld [vmem:[%s5277_s1 + $0x50] sm:$0xff]  }
   0x6   :  { %3074 = vmatprep.subr.bf16.mxu1 %v3501_v5  ;;  %v3509_v13 = vld [vmem:[%s5277_s1 + $0xe0] sm:$0xff]   ;;  %v3513_v17 = vld [vmem:[%s5277_s1 + $0xd8] sm:$0xff]   ;;  %v3517_v21 = vld [vmem:[%s5277_s1 + $0xd0] sm:$0xff]  }
   0x7   :  { %v3510_v14 = vld [vmem:[%s5277_s1 + $0x20] sm:$0xff]   ;;  %v3514_v18 = vld [vmem:[%s5277_s1 + $0x18] sm:$0xff]   ;;  %v3518_v22 = vld [vmem:[%s5277_s1 + $0x10] sm:$0xff]  }
   0x8   :  { %3053 = vmatpush3.bf16.msra.mxu0 %v3502_v6  ;;  %v3511_v15 = vld [vmem:[%s5277_s1 + $0xa0] sm:$0xff]   ;;  %v3515_v19 = vld [vmem:[%s5277_s1 + $0x98] sm:$0xff]   ;;  %v3519_v23 = vld [vmem:[%s5277_s1 + $0x90] sm:$0xff]  }
   0x9   :  { %3075 = vmatpush3.bf16.msra.mxu1 %v3503_v7  ;;  %3054 = vmatprep.subr.bf16.mxu0 %v3504_v8  ;;  %v3520_v24 = vld [vmem:[%s5277_s1 + $0x48] sm:$0xff]   ;;  %v3524_v28 = vld [vmem:[%s5277_s1 + $0x40] sm:$0xff]   ;;  %v3528_v35 = vld [vmem:[%s5277_s1 + $0x178] sm:$0xff]  }
   0xa   :  { %3076 = vmatprep.subr.bf16.mxu1 %v3505_v9  ;;  %v3521_v25 = vld [vmem:[%s5277_s1 + $0xc8] sm:$0xff]   ;;  %v3525_v29 = vld [vmem:[%s5277_s1 + $0xc0] sm:$0xff]   ;;  %v3529_v36 = vld [vmem:[%s5277_s1 + $0x1f8] sm:$0xff]  }
   0xb   :  { %v3522_v26 = vld [vmem:[%s5277_s1 + $0x8] sm:$0xff]   ;;  %v3526_v30 = vld [vmem:[%s5277_s1] sm:$0xff]   ;;  %v3530_v41 = vld [vmem:[%s5277_s1 + $0x138] sm:$0xff]  }
   0xc   :  { %3055 = vmatpush3.bf16.msra.mxu0 %v3506_v10  ;;  %v3523_v27 = vld [vmem:[%s5277_s1 + $0x88] sm:$0xff]   ;;  %v3527_v31 = vld [vmem:[%s5277_s1 + $0x80] sm:$0xff]   ;;  %v3531_v42 = vld [vmem:[%s5277_s1 + $0x1b8] sm:$0xff]  }
   0xd   :  { %3077 = vmatpush3.bf16.msra.mxu1 %v3507_v11  ;;  %3056 = vmatprep.subr.bf16.mxu0 %v3508_v12  ;;  %v33_v32 = vld [vmem:[%s5276_s0] sm:$0xff]  ;;  %v3532_v43 = vld [vmem:[%s5277_s1 + $0x170] sm:$0xff]   ;;  %v3536_v47 = vld [vmem:[%s5277_s1 + $0x168] sm:$0xff]  }
   0xe   :  { %3078 = vmatprep.subr.bf16.mxu1 %v3509_v13  ;;  %v35_v33 = vunpack.c.l.s8.bf16 %v33_v32  ;;  %v36_v34 = vunpack.c.h.s8.bf16 %v33_v32  ;;  %v3533_v44 = vld [vmem:[%s5277_s1 + $0x1f0] sm:$0xff]   ;;  %v3537_v48 = vld [vmem:[%s5277_s1 + $0x1e8] sm:$0xff]   ;;  %v3540_v51 = vld [vmem:[%s5277_s1 + $0x160] sm:$0xff]  }
   0xf   :  { %v3534_v45 = vld [vmem:[%s5277_s1 + $0x130] sm:$0xff]   ;;  %v3538_v49 = vld [vmem:[%s5277_s1 + $0x128] sm:$0xff]   ;;  %v3541_v52 = vld [vmem:[%s5277_s1 + $0x1e0] sm:$0xff]  }
  0x10   :  { %3057 = vmatpush3.bf16.msra.mxu0 %v3510_v14  ;;  %v2812_v37 = vcombine.high %v35_v33, %v35_v33  ;;  %v2814_v38 = vcombine.high %v36_v34, %v36_v34  ;;  %v2811_v39 = vcombine.low %v35_v33, %v35_v33  ;;  %v2813_v40 = vcombine.low %v36_v34, %v36_v34  ;;  %v3535_v46 = vld [vmem:[%s5277_s1 + $0x1b0] sm:$0xff]   ;;  %v3539_v50 = vld [vmem:[%s5277_s1 + $0x1a8] sm:$0xff]   ;;  %v3542_v53 = vld [vmem:[%s5277_s1 + $0x120] sm:$0xff]  }
  0x11   :  { %3079 = vmatpush3.bf16.msra.mxu1 %v3511_v15  ;;  %3058 = vmatprep.subr.bf16.mxu0 %v3512_v16  ;;  %v3543_v54 = vld [vmem:[%s5277_s1 + $0x1a0] sm:$0xff]   ;;  %v3544_v55 = vld [vmem:[%s5277_s1 + $0x158] sm:$0xff]   ;;  %v3548_v59 = vld [vmem:[%s5277_s1 + $0x150] sm:$0xff]  }
  0x12   :  { %3080 = vmatprep.subr.bf16.mxu1 %v3513_v17  ;;  %618 = vmatprep.mubr.bf16.mxu0 %v2812_v37  ;;  %v3545_v56 = vld [vmem:[%s5277_s1 + $0x1d8] sm:$0xff]   ;;  %v3549_v60 = vld [vmem:[%s5277_s1 + $0x1d0] sm:$0xff]   ;;  %v3552_v63 = vld [vmem:[%s5277_s1 + $0x148] sm:$0xff]  }
  0x13   :  { %658 = vmatprep.mubr.bf16.mxu1 %v2814_v38  ;;  %v3546_v57 = vld [vmem:[%s5277_s1 + $0x118] sm:$0xff]   ;;  %v3550_v61 = vld [vmem:[%s5277_s1 + $0x110] sm:$0xff]   ;;  %v3553_v0 = vld [vmem:[%s5277_s1 + $0x1c8] sm:$0xff]  }
  0x14   :  { %3059 = vmatpush3.bf16.msra.mxu0 %v3514_v18  ;;  %v3547_v58 = vld [vmem:[%s5277_s1 + $0x198] sm:$0xff]   ;;  %v3551_v62 = vld [vmem:[%s5277_s1 + $0x190] sm:$0xff]   ;;  %v3554_v1 = vld [vmem:[%s5277_s1 + $0x108] sm:$0xff]  }
  0x15   :  { %3081 = vmatpush3.bf16.msra.mxu1 %v3515_v19  ;;  %3060 = vmatprep.subr.bf16.mxu0 %v3516_v20  ;;  %v3555_v2 = vld [vmem:[%s5277_s1 + $0x188] sm:$0xff]   ;;  %v3556_v3 = vld [vmem:[%s5277_s1 + $0x140] sm:$0xff]  }
  0x16   :  { %3082 = vmatprep.subr.bf16.mxu1 %v3517_v21  ;;  %v3557_v4 = vld [vmem:[%s5277_s1 + $0x1c0] sm:$0xff]   ;;  %v34_v7 = vld [vmem:[%s5276_s0 + $0x8] sm:$0xff] }
  0x17   :  { %v3558_v5 = vld [vmem:[%s5277_s1 + $0x100] sm:$0xff]  }
  0x18   :  { %3061 = vmatpush3.bf16.msra.mxu0 %v3518_v22  ;;  %v3559_v6 = vld [vmem:[%s5277_s1 + $0x180] sm:$0xff]  }
  0x19   :  { %3083 = vmatpush3.bf16.msra.mxu1 %v3519_v23  ;;  %3062 = vmatprep.subr.bf16.mxu0 %v3520_v24 }
  0x1a   :  { %3084 = vmatprep.subr.bf16.mxu1 %v3521_v25 }
  0x1c   :  { %3063 = vmatpush3.bf16.msra.mxu0 %v3522_v26 }
  0x1d   :  { %3085 = vmatpush3.bf16.msra.mxu1 %v3523_v27  ;;  %3064 = vmatprep.subr.bf16.mxu0 %v3524_v28 }
  0x1e   :  { %3086 = vmatprep.subr.bf16.mxu1 %v3525_v29 }
  0x20   :  { %3065 = vmatpush3.bf16.msra.mxu0 %v3526_v30 }
  0x21   :  { %3087 = vmatpush3.bf16.msra.mxu1 %v3527_v31  ;;  %3094 = vmatprep.subr.bf16.mxu0 %v3528_v35 }
  0x22   :  { %3116 = vmatprep.subr.bf16.mxu1 %v3529_v36 }
  0x23   :  { %619 = vmatmul.mubr.bf16.vlgmr.msra.gmra.mxu0 %v2811_v39 }
  0x24   :  { %659 = vmatmul.mubr.bf16.vlgmr.msra.gmra.mxu1 %v2813_v40  ;;  %3095 = vmatpush3.bf16.msra.mxu0 %v3530_v41 }
  0x25   :  { %3117 = vmatpush3.bf16.msra.mxu1 %v3531_v42  ;;  %3096 = vmatprep.subr.bf16.mxu0 %v3532_v43 }
  0x26   :  { %3118 = vmatprep.subr.bf16.mxu1 %v3533_v44 }
  0x28   :  { %3097 = vmatpush3.bf16.msra.mxu0 %v3534_v45 }
  0x29   :  { %3119 = vmatpush3.bf16.msra.mxu1 %v3535_v46  ;;  %3098 = vmatprep.subr.bf16.mxu0 %v3536_v47 }
  0x2a   :  { %3120 = vmatprep.subr.bf16.mxu1 %v3537_v48 }
  0x2c   :  { %3099 = vmatpush3.bf16.msra.mxu0 %v3538_v49 }
  0x2d   :  { %3121 = vmatpush3.bf16.msra.mxu1 %v3539_v50  ;;  %3100 = vmatprep.subr.bf16.mxu0 %v3540_v51 }
  0x2e   :  { %3122 = vmatprep.subr.bf16.mxu1 %v3541_v52 }
  0x30   :  { %3101 = vmatpush3.bf16.msra.mxu0 %v3542_v53 }
  0x31   :  { %3123 = vmatpush3.bf16.msra.mxu1 %v3543_v54  ;;  %3102 = vmatprep.subr.bf16.mxu0 %v3544_v55 }
  0x32   :  { %3124 = vmatprep.subr.bf16.mxu1 %v3545_v56 }
  0x34   :  { %3103 = vmatpush3.bf16.msra.mxu0 %v3546_v57 }
  0x35   :  { %3125 = vmatpush3.bf16.msra.mxu1 %v3547_v58  ;;  %3104 = vmatprep.subr.bf16.mxu0 %v3548_v59 }
  0x36   :  { %3126 = vmatprep.subr.bf16.mxu1 %v3549_v60 }
  0x38   :  { %3105 = vmatpush3.bf16.msra.mxu0 %v3550_v61 }
  0x39   :  { %3127 = vmatpush3.bf16.msra.mxu1 %v3551_v62  ;;  %3106 = vmatprep.subr.bf16.mxu0 %v3552_v63 }
  0x3a   :  { %3128 = vmatprep.subr.bf16.mxu1 %v3553_v0 }
  0x3c   :  { %3107 = vmatpush3.bf16.msra.mxu0 %v3554_v1 }
  0x3d   :  { %3129 = vmatpush3.bf16.msra.mxu1 %v3555_v2  ;;  %3108 = vmatprep.subr.bf16.mxu0 %v3556_v3 }
  0x3e   :  { %3130 = vmatprep.subr.bf16.mxu1 %v3557_v4 }
  0x3f   :  { %15 = vsyncpa [#allocation3], 0  ;;  %v37_v8 = vunpack.c.l.s8.bf16 %v34_v7  ;;  %v38_v9 = vunpack.c.h.s8.bf16 %v34_v7  ;;  %v926_v14 = vlaneseq  ;;  %v5286_v22 = vmov 0.0   ;;  %v750_v25 = vld [vmem:[%s5279_s3 + $0x18] sm:$0xff]  ;;  %v749_v29 = vld [vmem:[%s5279_s3 + $0x10] sm:$0xff] }
  0x40   :  { %3109 = vmatpush3.bf16.msra.mxu0 %v3558_v5  ;;  %vm1236_vm3 = vcmask 64512   ;;  %v748_v32 = vld [vmem:[%s5279_s3 + $0x8] sm:$0xff]  ;;  %v747_v36 = vld [vmem:[%s5279_s3] sm:$0xff]  ;;  %vm3585_vm10 = vmmov 0  }
  0x41   :  { %3131 = vmatpush3.bf16.msra.mxu1 %v3559_v6  ;;  %v2816_v10 = vcombine.high %v37_v8, %v37_v8  ;;  %v2818_v11 = vcombine.high %v38_v9, %v38_v9  ;;  %v2815_v12 = vcombine.low %v37_v8, %v37_v8  ;;  %v2817_v13 = vcombine.low %v38_v9, %v38_v9 }
  0x42   :  { %v3836_v15 = vand.u32 127, %v926_v14  ;;  %v3838_v16 = vshrl.u32 %v926_v14, 7  ;;  %3294 = vmatprep.subr.mxu0 %v5286_v22  ;;  %3305 = vmatprep.subr.mxu1 %v5286_v22 }
  0x43   :  { %698 = vmatprep.mubr.bf16.mxu0 %v2816_v10  ;;  %738 = vmatprep.mubr.bf16.mxu1 %v2818_v11 }
  0x44   :  { %699 = vmatmul.mubr.bf16.vlgmr.msra.gmra.mxu0 %v2815_v12  ;;  %739 = vmatmul.mubr.bf16.vlgmr.msra.gmra.mxu1 %v2817_v13  ;;  %5387 = vst [vmem:[#allocation5_spill] sm:$0xff] %v3836_v15  ;;  %5388 = vst [vmem:[#allocation6_spill] sm:$0xff] %v3838_v16  ;;  %v3841_v17 = vadd.s32 240, %v3838_v16  ;;  %v3844_v18 = vmul.u32 32, %v3836_v15  ;;  %v3849_v20 = vadd.s32 112, %v3838_v16  ;;  %v3852_v21 = vcvt.s32.f32 %v3836_v15 }
  0x45   :  { %3295 = vmatpush3.msra.mxu0 %v750_v25  ;;  %v3867_v27 = vadd.s32 104, %v3838_v16  ;;  %v3886_v34 = vadd.s32 96, %v3838_v16  ;;  %3302 = vmatprep.mubr.msk.f32.mxu0 %vm3585_vm10, %v5286_v22  ;;  %v3904_v41 = vadd.s32 88, %v3838_v16  ;;  %v3914_v45 = vadd.s32 80, %v3838_v16 }
  0x46   :  { %5389 = vst [vmem:[#allocation7_spill] sm:$0xff] %v3841_v17  ;;  %v1027_v19 = vsub.s32 %v3841_v17, %v3844_v18  ;;  %v1011_v24 = vsub.s32 %v3849_v20, %v3844_v18  ;;  %3296 = vmatprep.subr.mxu0 %v5286_v22  ;;  %3337 = vmatprep.mubr.msk.f32.mxu1 %vm3585_vm10, %v5286_v22  ;;  %v3923_v49 = vadd.s32 56, %v3838_v16  ;;  %v3928_v51 = vadd.s32 48, %v3838_v16 }
  0x47   :  { %3297 = vmatpush3.msra.mxu0 %v749_v29  ;;  %v1010_v31 = vsub.s32 %v3867_v27, %v3844_v18  ;;  %v1009_v38 = vsub.s32 %v3886_v34, %v3844_v18  ;;  %v1008_v44 = vsub.s32 %v3904_v41, %v3844_v18  ;;  %v1007_v47 = vsub.s32 %v3914_v45, %v3844_v18 }
  0x48   :  { %vm1059_vm0 = vcmp.ge.s32.totalorder %v1027_v19, 0  ;;  %vm1091_vm1 = vcmp.lt.s32.totalorder %v1027_v19, 32  ;;  %vm1043_vm4 = vcmp.ge.s32.totalorder %v1011_v24, 0  ;;  %vm1075_vm5 = vcmp.lt.s32.totalorder %v1011_v24, 32  ;;  %3298 = vmatprep.subr.mxu0 %v5286_v22  ;;  %5391 = vst [vmem:[#allocation9_spill] sm:$0xff] %v3928_v51 }
  0x49   :  { %vm1123_vm2 = vmand %vm1059_vm0, %vm1091_vm1  ;;  %3299 = vmatpush3.msra.mxu0 %v748_v32  ;;  %vm1042_vm7 = vcmp.ge.s32.totalorder %v1010_v31, 0  ;;  %vm1074_vm8 = vcmp.lt.s32.totalorder %v1010_v31, 32  ;;  %vm1041_vm11 = vcmp.ge.s32.totalorder %v1009_v38, 0  ;;  %vm1073_vm12 = vcmp.lt.s32.totalorder %v1009_v38, 32 }
  0x4a   :  { %v3856_v23 = vsel %vm1123_vm2, 1.0, %v5286_v22  ;;  %vm1107_vm6 = vmand %vm1043_vm4, %vm1075_vm5  ;;  %3300 = vmatprep.subr.mxu0 %v5286_v22  ;;  %vm1040_vm14 = vcmp.ge.s32.totalorder %v1008_v44, 0  ;;  %vm1072_vm15 = vcmp.lt.s32.totalorder %v1008_v44, 32  ;;  %vm1039_vm1 = vcmp.ge.s32.totalorder %v1007_v47, 0 }
  0x4b   :  { %5390 = vst [vmem:[#allocation8_spill] sm:$0xff] %v3856_v23  ;;  %v1234_v26 = vmul.f32 %v3856_v23, %v3852_v21  ;;  %v3875_v30 = vsel %vm1107_vm6, 1.0, %v5286_v22  ;;  %vm1106_vm9 = vmand %vm1042_vm7, %vm1074_vm8  ;;  %3301 = vmatpush3.msra.mxu0 %v747_v36  ;;  %vm1071_vm2 = vcmp.lt.s32.totalorder %v1007_v47, 32  ;;  %v1004_v53 = vsub.s32 %v3923_v49, %v3844_v18 }
  0x4c   :  { %v1218_v33 = vmul.f32 %v3875_v30, %v3852_v21  ;;  %v3894_v37 = vsel %vm1106_vm9, 1.0, %v5286_v22  ;;  %vm1105_vm13 = vmand %vm1041_vm11, %vm1073_vm12  ;;  %v3934_v54 = vadd.s32 72, %v3838_v16  ;;  %v3937_v55 = vadd.s32 64, %v3838_v16 }
  0x4d   :  { %v1327_v28 = vsel %vm1236_vm3, %v1234_v26, 0.0  ;;  %v1217_v39 = vmul.f32 %v3894_v37, %v3852_v21  ;;  %v3907_v42 = vsel %vm1105_vm13, 1.0, %v5286_v22  ;;  %vm1104_vm0 = vmand %vm1040_vm14, %vm1072_vm15  ;;  %v3949_v60 = vadd.s32 40, %v3838_v16 }
  0x4e   :  { %1328 = vadd.xlane.f32.xlu1 %v1327_v28  ;;  %v1279_v35 = vsel %vm1236_vm3, %v1218_v33, 0.0  ;;  %v1216_v43 = vmul.f32 %v3907_v42, %v3852_v21  ;;  %v3920_v48 = vsel %vm1104_vm0, 1.0, %v5286_v22  ;;  %vm1103_vm4 = vmand %vm1039_vm1, %vm1071_vm2  ;;  %v1006_v58 = vsub.s32 %v3934_v54, %v3844_v18 }
  0x4f   :  { %v1276_v40 = vsel %vm1236_vm3, %v1217_v39, 0.0  ;;  %v1215_v50 = vmul.f32 %v3920_v48, %v3852_v21  ;;  %v3940_v56 = vsel %vm1103_vm4, 1.0, %v5286_v22  ;;  %v1005_v59 = vsub.s32 %v3937_v55, %v3844_v18  ;;  %5392 = vst [vmem:[#allocation10_spill] sm:$0xff] %v3949_v60 }
  0x50   :  { %v1273_v46 = vsel %vm1236_vm3, %v1216_v43, 0.0  ;;  %v1214_v57 = vmul.f32 %v3940_v56, %v3852_v21  ;;  %v1003_v61 = vsub.s32 %v3928_v51, %v3844_v18  ;;  %vm1036_vm5 = vcmp.ge.s32.totalorder %v1004_v53, 0 }
  0x51   :  { %v1270_v52 = vsel %vm1236_vm3, %v1215_v50, 0.0  ;;  %vm1038_vm6 = vcmp.ge.s32.totalorder %v1006_v58, 0  ;;  %vm1070_vm7 = vcmp.lt.s32.totalorder %v1006_v58, 32  ;;  %vm1068_vm8 = vcmp.lt.s32.totalorder %v1004_v53, 32 }
  0x52   :  { %1280 = vadd.xlane.f32.xlu1 %v1279_v35  ;;  %v1267_v62 = vsel %vm1236_vm3, %v1214_v57, 0.0  ;;  %vm1102_vm9 = vmand %vm1038_vm6, %vm1070_vm7  ;;  %vm1037_vm10 = vcmp.ge.s32.totalorder %v1005_v59, 0  ;;  %vm1069_vm11 = vcmp.lt.s32.totalorder %v1005_v59, 32  ;;  %v3955_v63 = vadd.s32 248, %v3838_v16 }
  0x53   :  { %v3958_v0 = vsel %vm1102_vm9, 1.0, %v5286_v22  ;;  %vm1101_vm12 = vmand %vm1037_vm10, %vm1069_vm11  ;;  %v3961_v1 = vadd.s32 32, %v3838_v16  ;;  %v1002_v5 = vsub.s32 %v3949_v60, %v3844_v18  ;;  %vm1035_vm13 = vcmp.ge.s32.totalorder %v1003_v61, 0 }
  0x54   :  { %5393 = vst [vmem:[#allocation11_spill] sm:$0xff] %v3955_v63  ;;  %v1213_v2 = vmul.f32 %v3958_v0, %v3852_v21  ;;  %v3966_v3 = vsel %vm1101_vm12, 1.0, %v5286_v22  ;;  %v1028_v4 = vsub.s32 %v3955_v63, %v3844_v18  ;;  %vm1067_vm14 = vcmp.lt.s32.totalorder %v1003_v61, 32  ;;  %vm1100_vm15 = vmand %vm1036_vm5, %vm1068_vm8 }
  0x55   :  { %5394 = vst [vmem:[#allocation12_spill] sm:$0xff] %v3961_v1  ;;  %v1212_v6 = vmul.f32 %v3966_v3, %v3852_v21  ;;  %v3977_v8 = vadd.s32 120, %v3838_v16  ;;  %v3980_v9 = vadd.s32 24, %v3838_v16  ;;  %v3983_v10 = vsel %vm1100_vm15, 1.0, %v5286_v22  ;;  %vm1099_vm5 = vmand %vm1035_vm13, %vm1067_vm14 }
  0x56   :  { %1277 = vadd.xlane.f32.xlu1 %v1276_v40  ;;  %v1264_v7 = vsel %vm1236_vm3, %v1213_v2, 0.0  ;;  %vm1060_vm0 = vcmp.ge.s32.totalorder %v1028_v4, 0  ;;  %vm1092_vm1 = vcmp.lt.s32.totalorder %v1028_v4, 32  ;;  %v1001_v14 = vsub.s32 %v3961_v1, %v3844_v18 }
  0x57   :  { %5395 = vst [vmem:[#allocation13_spill] sm:$0xff] %v3980_v9  ;;  %vm1124_vm2 = vmand %vm1060_vm0, %vm1092_vm1  ;;  %v1261_v11 = vsel %vm1236_vm3, %v1212_v6, 0.0  ;;  %v1012_v13 = vsub.s32 %v3977_v8, %v3844_v18  ;;  %vm1034_vm4 = vcmp.ge.s32.totalorder %v1002_v5, 0  ;;  %v1211_v24 = vmul.f32 %v3983_v10, %v3852_v21 }
  0x58   :  { %v3987_v12 = vsel %vm1124_vm2, 1.0, %v5286_v22  ;;  %vm1066_vm6 = vcmp.lt.s32.totalorder %v1002_v5, 32  ;;  %v4000_v25 = vadd.s32 232, %v3838_v16  ;;  %v4003_v26 = vadd.s32 16, %v3838_v16 }
  0x59   :  { %5396 = vst [vmem:[#allocation14_spill] sm:$0xff] %v3987_v12  ;;  %v1235_v19 = vmul.f32 %v3987_v12, %v3852_v21  ;;  %vm1044_vm7 = vcmp.ge.s32.totalorder %v1012_v13, 0  ;;  %vm1076_vm8 = vcmp.lt.s32.totalorder %v1012_v13, 32  ;;  %v4007_v29 = vsel %vm1099_vm5, 1.0, %v5286_v22  ;;  %vm1098_vm11 = vmand %vm1034_vm4, %vm1066_vm6 }
  0x5a   :  { %1274 = vadd.xlane.f32.xlu1 %v1273_v46  ;;  %5397 = vst [vmem:[#allocation15_spill] sm:$0xff] %v4000_v25  ;;  %5398 = vst [vmem:[#allocation16_spill] sm:$0xff] %v4003_v26  ;;  %v1258_v31 = vsel %vm1236_vm3, %v1211_v24, 0.0  ;;  %v1026_v33 = vsub.s32 %v4000_v25, %v3844_v18  ;;  %v1000_v35 = vsub.s32 %v3980_v9, %v3844_v18  ;;  %vm1033_vm10 = vcmp.ge.s32.totalorder %v1001_v14, 0 }
  0x5b   :  { %v1330_v28 = vsel %vm1236_vm3, %v1235_v19, 0.0  ;;  %vm1108_vm9 = vmand %vm1044_vm7, %vm1076_vm8  ;;  %v1210_v38 = vmul.f32 %v4007_v29, %v3852_v21  ;;  %vm1065_vm12 = vcmp.lt.s32.totalorder %v1001_v14, 32  ;;  %v4024_v39 = vadd.s32 224, %v3838_v16 }
  0x5c   :  { %1331 = vadd.xlane.f32.xlu0 %v1330_v28  ;;  %v4011_v32 = vsel %vm1108_vm9, 1.0, %v5286_v22  ;;  %vm1058_vm13 = vcmp.ge.s32.totalorder %v1026_v33, 0  ;;  %vm1090_vm14 = vcmp.lt.s32.totalorder %v1026_v33, 32  ;;  %v4028_v43 = vsel %vm1098_vm11, 1.0, %v5286_v22  ;;  %vm1097_vm0 = vmand %vm1033_vm10, %vm1065_vm12 }
  0x5d   :  { %v1219_v36 = vmul.f32 %v4011_v32, %v3852_v21  ;;  %5399 = vst [vmem:[#allocation17_spill] sm:$0xff] %v4024_v39  ;;  %vm1122_vm15 = vmand %vm1058_vm13, %vm1090_vm14  ;;  %v1255_v44 = vsel %vm1236_vm3, %v1210_v38, 0.0  ;;  %v1025_v47 = vsub.s32 %v4024_v39, %v3844_v18  ;;  %v4037_v50 = vadd.s32 8, %v3838_v16 }
  0x5e   :  { %1271 = vadd.xlane.f32.xlu1 %v1270_v52  ;;  %v4032_v46 = vsel %vm1122_vm15, 1.0, %v5286_v22  ;;  %v999_v52 = vsub.s32 %v4003_v26, %v3844_v18  ;;  %v1209_v57 = vmul.f32 %v4028_v43, %v3852_v21  ;;  %vm1032_vm1 = vcmp.ge.s32.totalorder %v1000_v35, 0 }
  0x5f   :  { %v1282_v40 = vsel %vm1236_vm3, %v1219_v36, 0.0  ;;  %5400 = vst [vmem:[#allocation18_spill] sm:$0xff] %v4032_v46  ;;  %5401 = vst [vmem:[#allocation19_spill] sm:$0xff] %v4037_v50  ;;  %v1233_v53 = vmul.f32 %v4032_v46, %v3852_v21  ;;  %vm1064_vm2 = vcmp.lt.s32.totalorder %v1000_v35, 32  ;;  %vm1057_vm4 = vcmp.ge.s32.totalorder %v1025_v47, 0 }
  0x60   :  { %1283 = vadd.xlane.f32.xlu0 %v1282_v40  ;;  %vm1089_vm5 = vcmp.lt.s32.totalorder %v1025_v47, 32  ;;  %v4048_v59 = vsel %vm1097_vm0, 1.0, %v5286_v22  ;;  %v1252_v61 = vsel %vm1236_vm3, %v1209_v57, 0.0  ;;  %v998_v2 = vsub.s32 %v4037_v50, %v3844_v18  ;;  %vm1096_vm7 = vmand %vm1032_vm1, %vm1064_vm2 }
  0x61   :  { %v1324_v58 = vsel %vm1236_vm3, %v1233_v53, 0.0  ;;  %vm1121_vm6 = vmand %vm1057_vm4, %vm1089_vm5  ;;  %v1208_v5 = vmul.f32 %v4048_v59, %v3852_v21  ;;  %vm1031_vm8 = vcmp.ge.s32.totalorder %v999_v52, 0  ;;  %vm1063_vm9 = vcmp.lt.s32.totalorder %v999_v52, 32 }
  0x62   :  { %1268 = vadd.xlane.f32.xlu1 %v1267_v62  ;;  %v4052_v62 = vadd.s32 216, %v3838_v16  ;;  %v4057_v4 = vsel %vm1121_vm6, 1.0, %v5286_v22  ;;  %v997_v19 = vsub.s32 %v3838_v16, %v3844_v18  ;;  %vm1095_vm11 = vmand %vm1031_vm8, %vm1063_vm9  ;;  %vm1030_vm13 = vcmp.ge.s32.totalorder %v998_v2, 0 }
  0x63   :  { %5403 = vst [vmem:[#allocation21_spill] sm:$0xff] %v4057_v4  ;;  %v1232_v6 = vmul.f32 %v4057_v4, %v3852_v21  ;;  %v1249_v14 = vsel %vm1236_vm3, %v1208_v5, 0.0  ;;  %vm1062_vm14 = vcmp.lt.s32.totalorder %v998_v2, 32  ;;  %v4075_v28 = vadd.s32 208, %v3838_v16 }
  0x64   :  { %1325 = vadd.xlane.f32.xlu0 %v1324_v58  ;;  %5402 = vst [vmem:[#allocation20_spill] sm:$0xff] %v4052_v62  ;;  %v4081_v33 = vadd.s32 184, %v3838_v16  ;;  %v4084_v35 = vsel %vm1095_vm11, 1.0, %v5286_v22  ;;  %vm1029_vm0 = vcmp.ge.s32.totalorder %v997_v19, 0  ;;  %vm1061_vm1 = vcmp.lt.s32.totalorder %v997_v19, 32  ;;  %vm1094_vm2 = vmand %vm1030_vm13, %vm1062_vm14 }
  0x65   :  { %v1321_v13 = vsel %vm1236_vm3, %v1232_v6, 0.0  ;;  %5404 = vst [vmem:[#allocation22_spill] sm:$0xff] %v4075_v28  ;;  %v1023_v40 = vsub.s32 %v4075_v28, %v3844_v18  ;;  %v4095_v52 = vadd.s32 176, %v3838_v16  ;;  %v4098_v53 = vadd.s32 200, %v3838_v16 }
  0x66   :  { %1265 = vadd.xlane.f32.xlu1 %v1264_v7  ;;  %v1024_v7 = vsub.s32 %v4052_v62, %v3844_v18  ;;  %5406 = vst [vmem:[#allocation24_spill] sm:$0xff] %v4081_v33  ;;  %v4101_v57 = vadd.s32 192, %v3838_v16  ;;  %v1020_v58 = vsub.s32 %v4081_v33, %v3844_v18  ;;  %v4114_v6 = vadd.s32 168, %v3838_v16  ;;  %v2810_v62 = vld [vmem:[%s5278_s2] ss:$0 sm:$0xff] }
  0x67   :  { %5407 = vst [vmem:[#allocation25_spill] sm:$0xff] %v4095_v52  ;;  %5408 = vst [vmem:[#allocation26_spill] sm:$0xff] %v4098_v53  ;;  %vm1055_vm4 = vcmp.ge.s32.totalorder %v1023_v40, 0  ;;  %vm1087_vm5 = vcmp.lt.s32.totalorder %v1023_v40, 32  ;;  %v1022_v5 = vsub.s32 %v4098_v53, %v3844_v18  ;;  %v5415_v15 = vmov 0.0  }
  0x68   :  { %vm1056_vm10 = vcmp.ge.s32.totalorder %v1024_v7, 0  ;;  %1322 = vadd.xlane.f32.xlu0 %v1321_v13  ;;  %vm1088_vm12 = vcmp.lt.s32.totalorder %v1024_v7, 32  ;;  %5409 = vst [vmem:[#allocation27_spill] sm:$0xff] %v4101_v57  ;;  %vm1119_vm6 = vmand %vm1055_vm4, %vm1087_vm5  ;;  %vm1084_vm11 = vcmp.lt.s32.totalorder %v1020_v58, 32  ;;  %v4159_v63 = vadd.s32 152, %v3838_v16 }
  0x69   :  { %vm1120_vm15 = vmand %vm1056_vm10, %vm1088_vm12  ;;  %5410 = vst [vmem:[#allocation28_spill] sm:$0xff] %v4114_v6  ;;  %v4117_v7 = vsel %vm1119_vm6, 1.0, %v5286_v22  ;;  %vm1054_vm8 = vcmp.ge.s32.totalorder %v1022_v5, 0  ;;  %vm1086_vm9 = vcmp.lt.s32.totalorder %v1022_v5, 32  ;;  %vm1052_vm10 = vcmp.ge.s32.totalorder %v1020_v58, 0 }
  0x6a   :  { %1262 = vadd.xlane.f32.xlu1 %v1261_v11  ;;  %v4066_v11 = vsel %vm1096_vm7, 1.0, %v5286_v22  ;;  %vm1093_vm7 = vmand %vm1029_vm0, %vm1061_vm1  ;;  %5411 = vst [vmem:[#allocation29_spill] sm:$0xff] %v4117_v7 }
  0x6b   :  { %v1207_v24 = vmul.f32 %v4066_v11, %v3852_v21  ;;  %vm1118_vm12 = vmand %vm1054_vm8, %vm1086_vm9  ;;  %v4128_v19 = vsel %vm1093_vm7, 1.0, %v5286_v22  ;;  %5417 = vst [vmem:[#allocation34_spill] sm:$0xff] %v4159_v63 }
  0x6c   :  { %v4132_v40 = vsel %vm1118_vm12, 1.0, %v5286_v22  ;;  %v1204_v5 = vmul.f32 %v4128_v19, %v3852_v21  ;;  %vm1116_vm0 = vmand %vm1052_vm10, %vm1084_vm11 }
  0x6d   :  { %v1246_v38 = vsel %vm1236_vm3, %v1207_v24, 0.0  ;;  %v1230_v24 = vmul.f32 %v4117_v7, %v3852_v21  ;;  %5412 = vst [vmem:[#allocation30_spill] sm:$0xff] %v4132_v40 }
  0x6e   :  { %1259 = vadd.xlane.f32.xlu1 %v1258_v31  ;;  %v4078_v31 = vsel %vm1120_vm15, 1.0, %v5286_v22 }
  0x6f   :  { %5405 = vst [vmem:[#allocation23_spill] sm:$0xff] %v4078_v31  ;;  %v1231_v36 = vmul.f32 %v4078_v31, %v3852_v21 }
  0x71   :  { %v1318_v47 = vsel %vm1236_vm3, %v1231_v36, 0.0  ;;  %v1019_v36 = vsub.s32 %v4095_v52, %v3844_v18  ;;  %v4153_v52 = vsel %vm1116_vm0, 1.0, %v5415_v15 }
  0x72   :  { %1256 = vadd.xlane.f32.xlu1 %v1255_v44  ;;  %v1206_v44 = vmul.f32 %v4084_v35, %v3852_v21  ;;  %1319 = vadd.xlane.f32.xlu0 %v1318_v47  ;;  %v1229_v47 = vmul.f32 %v4132_v40, %v3852_v21  ;;  %5416 = vst [vmem:[#allocation33_spill] sm:$0xff] %v4153_v52 }
  0x73   :  { %vm1051_vm1 = vcmp.ge.s32.totalorder %v1019_v36, 0  ;;  %v1227_v17 = vmul.f32 %v4153_v52, %v3852_v21 }
  0x74   :  { %v1243_v2 = vsel %vm1236_vm3, %v1206_v44, 0.0 }
  0x76   :  { %1253 = vadd.xlane.f32.xlu1 %v1252_v61  ;;  %v4106_v61 = vsel %vm1094_vm2, 1.0, %v5286_v22  ;;  %vm1083_vm2 = vcmp.lt.s32.totalorder %v1019_v36, 32 }
  0x77   :  { %v1205_v13 = vmul.f32 %v4106_v61, %v3852_v21  ;;  %vm1115_vm4 = vmand %vm1051_vm1, %vm1083_vm2 }
  0x79   :  { %v1240_v44 = vsel %vm1236_vm3, %v1205_v13, 0.0  ;;  %v1018_v13 = vsub.s32 %v4114_v6, %v3844_v18  ;;  %v4206_v6 = vadd.s32 128, %v3838_v16 }
  0x7a   :  { %1250 = vadd.xlane.f32.xlu1 %v1249_v14  ;;  %v1021_v14 = vsub.s32 %v4101_v57, %v3844_v18 }
  0x7b   :  { %vm1050_vm5 = vcmp.ge.s32.totalorder %v1018_v13, 0  ;;  %vm1082_vm6 = vcmp.lt.s32.totalorder %v1018_v13, 32  ;;  %v848_v13 = vld [vmem:[%s5281_s5 + $0x78] sm:$0xff]  ;;  %5423 = vst [vmem:[#allocation40_spill] sm:$0xff] %v4206_v6 }
  0x7c   :  { %vm1053_vm13 = vcmp.ge.s32.totalorder %v1021_v14, 0  ;;  %vm1085_vm14 = vcmp.lt.s32.totalorder %v1021_v14, 32  ;;  %v4143_v14 = vadd.s32 160, %v3838_v16  ;;  %vm1114_vm7 = vmand %vm1050_vm5, %vm1082_vm6  ;;  %3306 = vmatpush3.msra.mxu1 %v848_v13  ;;  %v845_v13 = vld [vmem:[%s5281_s5 + $0x60] sm:$0xff] }
  0x7d   :  { %vm1117_vm15 = vmand %vm1053_vm13, %vm1085_vm14  ;;  %3307 = vmatprep.subr.mxu1 %v5415_v15 }
  0x7e   :  { %1247 = vadd.xlane.f32.xlu1 %v1246_v38  ;;  %v1315_v38 = vsel %vm1236_vm3, %v1230_v24, 0.0  ;;  %5414 = vst [vmem:[#allocation32_spill] sm:$0xff] %v4143_v14  ;;  %v1017_v36 = vsub.s32 %v4143_v14, %v3844_v18  ;;  %v846_v14 = vld [vmem:[%s5281_s5 + $0x68] sm:$0xff] }
  0x7f   :  { %1316 = vadd.xlane.f32.xlu0 %v1315_v38  ;;  %v1312_v38 = vsel %vm1236_vm3, %v1229_v47, 0.0  ;;  %v1306_v47 = vsel %vm1236_vm3, %v1227_v17, 0.0  ;;  %v847_v17 = vld [vmem:[%s5281_s5 + $0x70] sm:$0xff] }
  0x80   :  { %vm1049_vm8 = vcmp.ge.s32.totalorder %v1017_v36, 0  ;;  %vm1081_vm9 = vcmp.lt.s32.totalorder %v1017_v36, 32  ;;  %v4187_v36 = vadd.s32 136, %v3838_v16  ;;  %3308 = vmatpush3.msra.mxu1 %v847_v17 }
  0x81   :  { %vm1113_vm10 = vmand %vm1049_vm8, %vm1081_vm9  ;;  %3309 = vmatprep.subr.mxu1 %v5415_v15  ;;  %vm758_vm8 = vcmask 261120  }
  0x82   :  { %1244 = vadd.xlane.f32.xlu1 %v1243_v2  ;;  %v4138_v2 = vsel %vm1117_vm15, 1.0, %v5286_v22  ;;  %v1237_v22 = vsel %vm1236_vm3, %v1204_v5, 0.0  ;;  %5421 = vst [vmem:[#allocation38_spill] sm:$0xff] %v4187_v36  ;;  %3310 = vmatpush3.msra.mxu1 %v846_v14  ;;  %v1014_v17 = vsub.s32 %v4187_v36, %v3844_v18  ;;  %v843_v14 = vld [vmem:[%s5281_s5 + $0x50] sm:$0xff] }
  0x83   :  { %5413 = vst [vmem:[#allocation31_spill] sm:$0xff] %v4138_v2  ;;  %v1228_v24 = vmul.f32 %v4138_v2, %v3852_v21  ;;  %1313 = vadd.xlane.f32.xlu0 %v1312_v38  ;;  %v1016_v38 = vsub.s32 %v4159_v63, %v3844_v18  ;;  %3311 = vmatprep.subr.mxu1 %v5415_v15 }
  0x84   :  { %3312 = vmatpush3.msra.mxu1 %v845_v13  ;;  %v1013_v13 = vsub.s32 %v4206_v6, %v3844_v18  ;;  %vm1046_vm1 = vcmp.ge.s32.totalorder %v1014_v17, 0  ;;  %vm1078_vm2 = vcmp.lt.s32.totalorder %v1014_v17, 32 }
  0x85   :  { %v1309_v58 = vsel %vm1236_vm3, %v1228_v24, 0.0  ;;  %v4170_v24 = vadd.s32 144, %v3838_v16  ;;  %vm1048_vm11 = vcmp.ge.s32.totalorder %v1016_v38, 0  ;;  %vm1080_vm12 = vcmp.lt.s32.totalorder %v1016_v38, 32  ;;  %3313 = vmatprep.subr.mxu1 %v5415_v15 }
  0x86   :  { %1241 = vadd.xlane.f32.xlu1 %v1240_v44  ;;  %v4164_v44 = vsel %vm1115_vm4, 1.0, %v5415_v15  ;;  %vm1112_vm13 = vmand %vm1048_vm11, %vm1080_vm12  ;;  %vm1045_vm5 = vcmp.ge.s32.totalorder %v1013_v13, 0  ;;  %vm1077_vm6 = vcmp.lt.s32.totalorder %v1013_v13, 32 }
  0x87   :  { %5418 = vst [vmem:[#allocation35_spill] sm:$0xff] %v4164_v44  ;;  %1310 = vadd.xlane.f32.xlu0 %v1309_v58  ;;  %v1226_v5 = vmul.f32 %v4164_v44, %v3852_v21  ;;  %5419 = vst [vmem:[#allocation36_spill] sm:$0xff] %v4170_v24 }
  0x88   :  { %vm1110_vm4 = vmand %vm1046_vm1, %vm1078_vm2 }
  0x89   :  { %v1303_v58 = vsel %vm1236_vm3, %v1226_v5, 0.0  ;;  %v4196_v5 = vsel %vm1113_vm10, 1.0, %v5415_v15 }
  0x8a   :  { %1238 = vadd.xlane.f32.xlu1 %v1237_v22  ;;  %v4175_v22 = vsel %vm1114_vm7, 1.0, %v5415_v15  ;;  %5422 = vst [vmem:[#allocation39_spill] sm:$0xff] %v4196_v5  ;;  %vm1109_vm7 = vmand %vm1045_vm5, %vm1077_vm6 }
  0x8b   :  { %5420 = vst [vmem:[#allocation37_spill] sm:$0xff] %v4175_v22  ;;  %1307 = vadd.xlane.f32.xlu0 %v1306_v47  ;;  %v1225_v63 = vmul.f32 %v4175_v22, %v3852_v21  ;;  %v1015_v47 = vsub.s32 %v4170_v24, %v3844_v18  ;;  %v1224_v24 = vmul.f32 %v4196_v5, %v3852_v21 }
  0x8d   :  { %v1300_v38 = vsel %vm1236_vm3, %v1225_v63, 0.0  ;;  %vm1047_vm14 = vcmp.ge.s32.totalorder %v1015_v47, 0  ;;  %vm1079_vm15 = vcmp.lt.s32.totalorder %v1015_v47, 32  ;;  %v4215_v63 = vsel %vm1112_vm13, 1.0, %v5415_v15 }
  0x8e   :  { %5424 = vst [vmem:[#allocation41_spill] sm:$0xff] %v4215_v63  ;;  %vm1111_vm0 = vmand %vm1047_vm14, %vm1079_vm15  ;;  %v1297_v47 = vsel %vm1236_vm3, %v1224_v24, 0.0  ;;  %v1223_v36 = vmul.f32 %v4215_v63, %v3852_v21  ;;  %v841_v24 = vld [vmem:[%s5281_s5 + $0x40] sm:$0xff] }
  0x8f   :  { %1304 = vadd.xlane.f32.xlu0 %v1303_v58  ;;  %v844_v58 = vld [vmem:[%s5281_s5 + $0x58] sm:$0xff]  ;;  %v4231_v16 = vsel %vm1111_vm0, 1.0, %v5415_v15 }
  0x90   :  { %3314 = vmatpush3.msra.mxu1 %v844_v58  ;;  %5425 = vst [vmem:[#allocation42_spill] sm:$0xff] %v4231_v16  ;;  %v1294_v18 = vsel %vm1236_vm3, %v1223_v36, 0.0  ;;  %v1222_v17 = vmul.f32 %v4231_v16, %v3852_v21  ;;  %v840_v58 = vld [vmem:[%s5281_s5 + $0x38] sm:$0xff]  ;;  %v839_v36 = vld [vmem:[%s5281_s5 + $0x30] sm:$0xff] }
  0x91   :  { %3315 = vmatprep.subr.mxu1 %v5415_v15 }
  0x92   :  { %3316 = vmatpush3.msra.mxu1 %v843_v14  ;;  %v4245_v14 = vsel %vm1110_vm4, 1.0, %v5415_v15 }
  0x93   :  { %1301 = vadd.xlane.f32.xlu0 %v1300_v38  ;;  %v842_v38 = vld [vmem:[%s5281_s5 + $0x48] sm:$0xff]  ;;  %3317 = vmatprep.subr.mxu1 %v5415_v15  ;;  %5426 = vst [vmem:[#allocation43_spill] sm:$0xff] %v4245_v14  ;;  %v1221_v13 = vmul.f32 %v4245_v14, %v3852_v21 }
  0x94   :  { %3318 = vmatpush3.msra.mxu1 %v842_v38  ;;  %v838_v38 = vld [vmem:[%s5281_s5 + $0x28] sm:$0xff] }
  0x95   :  { %3319 = vmatprep.subr.mxu1 %v5415_v15 }
  0x96   :  { %3320 = vmatpush3.msra.mxu1 %v841_v24  ;;  %v4259_v24 = vsel %vm1109_vm7, 1.0, %v5415_v15 }
  0x97   :  { %1298 = vadd.xlane.f32.xlu0 %v1297_v47  ;;  %3321 = vmatprep.subr.mxu1 %v5415_v15  ;;  %v1291_v47 = vsel %vm1236_vm3, %v1222_v17, 0.0  ;;  %5427 = vst [vmem:[#allocation44_spill] sm:$0xff] %v4259_v24  ;;  %v1220_v50 = vmul.f32 %v4259_v24, %v3852_v21 }
  0x98   :  { %3322 = vmatpush3.msra.mxu1 %v840_v58  ;;  %v1288_v58 = vsel %vm1236_vm3, %v1221_v13, 0.0 }
  0x99   :  { %3323 = vmatprep.subr.mxu1 %v5415_v15  ;;  %v1285_v13 = vsel %vm1236_vm3, %v1220_v50, 0.0 }
  0x9a   :  { %3324 = vmatpush3.msra.mxu1 %v839_v36  ;;  %v836_v36 = vld [vmem:[%s5281_s5 + $0x18] sm:$0xff] }
  0x9b   :  { %1295 = vadd.xlane.f32.xlu0 %v1294_v18  ;;  %3325 = vmatprep.subr.mxu1 %v5415_v15  ;;  %v837_v18 = vld [vmem:[%s5281_s5 + $0x20] sm:$0xff] }
  0x9c   :  { %3326 = vmatpush3.msra.mxu1 %v838_v38 }
  0x9d   :  { %3327 = vmatprep.subr.mxu1 %v5415_v15 }
  0x9e   :  { %3328 = vmatpush3.msra.mxu1 %v837_v18 }
  0x9f   :  { %1292 = vadd.xlane.f32.xlu0 %v1291_v47  ;;  %3329 = vmatprep.subr.mxu1 %v5415_v15 }
  0xa0   :  { %3330 = vmatpush3.msra.mxu1 %v836_v36 }
  0xa1   :  { %3331 = vmatprep.subr.mxu1 %v5415_v15 }
  0xa3   :  { %1289 = vadd.xlane.f32.xlu0 %v1288_v58 }
  0xa7   :  { %1286 = vadd.xlane.f32.xlu0 %v1285_v13 }
  0xe3   :  { %v3066_v17 = vpop.f32.mrf.mxu0 }
  0xe4   :  { %v3088_v6 = vpop.f32.mrf.mxu1 }
  0xe5   :  { %v3067_v47 = vpop.f32.mrf.mxu0 }
  0xe6   :  { %v3089_v39 = vpop.f32.mrf.mxu1  ;;  %v3068_v9 = vadd.f32 %v3067_v47, %v3066_v17 }
  0xe7   :  { %v3069_v26 = vpop.f32.mrf.mxu0  ;;  %v3090_v18 = vadd.f32 %v3089_v39, %v3088_v6  ;;  %v4367_v6 = vpop.xlane.xlu0 %1331 }
  0xe8   :  { %v3091_v25 = vpop.f32.mrf.mxu1  ;;  %v621_v1 = vadd.f32 %v3068_v9, %v2810_v62  ;;  %v4361_v9 = vpop.xlane.xlu1 %1328 }
  0xe9   :  { %v3070_v38 = vpop.f32.mrf.mxu0 }
  0xea   :  { %v3092_v28 = vpop.f32.mrf.mxu1  ;;  %v661_v25 = vadd.f32 %v3090_v18, %v621_v1  ;;  %v833_v1 = vld [vmem:[%s5281_s5] sm:$0xff] }
  0xeb   :  { %v4369_v18 = vpop.xlane.xlu0 %1283 }
  0xec   :  { %v4363_v39 = vpop.xlane.xlu1 %1280 }
  0xf0   :  { %v1278_v62 = vpop.xlane.xlu1 %1277 }
 0x104   :  { %v3110_v58 = vpop.f32.mrf.mxu0  ;;  %v3132_v57 = vpop.f32.mrf.mxu1 }
 0x106   :  { %v3111_v53 = vpop.f32.mrf.mxu0  ;;  %v3133_v26 = vpop.f32.mrf.mxu1 }
 0x107   :  { %v3112_v60 = vadd.f32 %v3111_v53, %v3110_v58  ;;  %v3134_v33 = vadd.f32 %v3133_v26, %v3132_v57  ;;  %v4371_v26 = vpop.xlane.xlu0 %1325 }
 0x108   :  { %v3113_v50 = vpop.f32.mrf.mxu0  ;;  %v3135_v36 = vpop.f32.mrf.mxu1 }
 0x109   :  { %v701_v51 = vadd.f32 %v3112_v60, %v661_v25  ;;  %v834_v60 = vld [vmem:[%s5281_s5 + $0x8] sm:$0xff]  ;;  %v2883_v25 = vld [vmem:[%s5280_s4] ss:$0 sm:$0xff] }
 0x10a   :  { %v3114_v38 = vpop.f32.mrf.mxu0  ;;  %v3136_v28 = vpop.f32.mrf.mxu1 }
 0x10b   :  { %v741_v13 = vadd.f32 %v3134_v33, %v701_v51  ;;  %v835_v51 = vld [vmem:[%s5281_s5 + $0x10] sm:$0xff]  ;;  %v4365_v33 = vpop.xlane.xlu1 %1274 }
 0x10c   :  { %3332 = vmatpush3.msra.mxu1 %v835_v51 }
 0x10d   :  { %v4278_v17 = vmax.f32 %v741_v13, 0.0  ;;  %3333 = vmatprep.subr.mxu1 %v5415_v15  ;;  %v1340_v13 = vcvt.s32.f32 %v3923_v49 }
 0x10e   :  { %3334 = vmatpush3.msra.mxu1 %v834_v60 }
 0x10f   :  { %3303 = vmatmul.mubr.msk.f32.vlgmr.msra.gmra.mxu0 %vm758_vm8, %v4278_v17  ;;  %3340 = vmatprep.subr.mxu0 %v4278_v17  ;;  %v1272_v53 = vpop.xlane.xlu1 %1271 }
 0x110   :  { %3341 = vmatpush3.msra.mxu0 %v4278_v17  ;;  %3342 = vmatprep.mubr.msk.f32.mxu0 %vm1236_vm3, %v4128_v19 }
 0x111   :  { %3335 = vmatprep.subr.mxu1 %v5415_v15 }
 0x112   :  { %3336 = vmatpush3.msra.mxu1 %v833_v1  ;;  %v4380_v1 = vpop.xlane.xlu0 %1322 }
 0x113   :  { %3343 = vmatmul.mubr.msk.f32.vlgmr.msra.gmra.mxu0 %vm1236_vm3, %v4106_v61  ;;  %v1269_v57 = vpop.xlane.xlu1 %1268 }
 0x114   :  { %3345 = vmatprep.mubr.msk.f32.mxu0 %vm1236_vm3, %v4084_v35 }
 0x116   :  { %v4390_v49 = vpop.xlane.xlu0 %1319 }
 0x117   :  { %3346 = vmatmul.mubr.msk.f32.gmra.mxu0 %vm1236_vm3, %v4066_v11  ;;  %v1266_v47 = vpop.xlane.xlu1 %1265 }
 0x118   :  { %3348 = vmatprep.mubr.msk.f32.mxu0 %vm1236_vm3, %v4048_v59 }
 0x11b   :  { %3349 = vmatmul.mubr.msk.f32.gmra.mxu0 %vm1236_vm3, %v4028_v43  ;;  %v1263_v58 = vpop.xlane.xlu1 %1262 }
 0x11c   :  { %3351 = vmatprep.mubr.msk.f32.mxu0 %vm1236_vm3, %v4007_v29 }
 0x11f   :  { %3352 = vmatmul.mubr.msk.f32.gmra.mxu0 %vm1236_vm3, %v3983_v10  ;;  %v1260_v38 = vpop.xlane.xlu1 %1259 }
 0x120   :  { %3354 = vmatprep.mubr.msk.f32.mxu0 %vm1236_vm3, %v3966_v3  ;;  %v1372_v51 = vmul.f32 32.0, %v1260_v38 }
 0x123   :  { %3355 = vmatmul.mubr.msk.f32.gmra.mxu0 %vm1236_vm3, %v3958_v0 }
 0x124   :  { %3357 = vmatprep.mubr.msk.f32.mxu0 %vm1236_vm3, %v3940_v56 }
 0x127   :  { %3358 = vmatmul.mubr.msk.f32.gmra.mxu0 %vm1236_vm3, %v3920_v48 }
 0x128   :  { %3360 = vmatprep.mubr.msk.f32.mxu0 %vm1236_vm3, %v3907_v42 }
 0x12b   :  { %3361 = vmatmul.mubr.msk.f32.gmra.mxu0 %vm1236_vm3, %v3894_v37 }
 0x12c   :  { %3363 = vmatprep.mubr.msk.f32.mxu0 %vm1236_vm3, %v3875_v30 }
 0x12f   :  { %3364 = vmatmul.mubr.msk.f32.gmra.mxu0 %vm1236_vm3, %v4011_v32 }
 0x130   :  { %3366 = vmatprep.mubr.msk.f32.mxu0 %vm1236_vm3, %v4259_v24 }
 0x133   :  { %3367 = vmatmul.mubr.msk.f32.gmra.mxu0 %vm1236_vm3, %v4245_v14 }
 0x134   :  { %3369 = vmatprep.mubr.msk.f32.mxu0 %vm1236_vm3, %v4231_v16 }
 0x137   :  { %3370 = vmatmul.mubr.msk.f32.gmra.mxu0 %vm1236_vm3, %v4215_v63 }
 0x138   :  { %3372 = vmatprep.mubr.msk.f32.mxu0 %vm1236_vm3, %v4196_v5 }
 0x13b   :  { %3373 = vmatmul.mubr.msk.f32.gmra.mxu0 %vm1236_vm3, %v4175_v22 }
 0x13c   :  { %3375 = vmatprep.mubr.msk.f32.mxu0 %vm1236_vm3, %v4164_v44 }
 0x13f   :  { %3376 = vmatmul.mubr.msk.f32.gmra.mxu0 %vm1236_vm3, %v4153_v52  ;;  %v1257_v52 = vpop.xlane.xlu1 %1256 }
 0x140   :  { %3378 = vmatprep.mubr.msk.f32.mxu0 %vm1236_vm3, %v4138_v2  ;;  %v1376_v2 = vmul.f32 32.0, %v1272_v53 }
 0x143   :  { %3379 = vmatmul.mubr.msk.f32.gmra.mxu0 %vm1236_vm3, %v4132_v40 }
 0x144   :  { %3381 = vmatprep.mubr.msk.f32.mxu0 %vm1236_vm3, %v4117_v7 }
 0x147   :  { %3382 = vmatmul.mubr.msk.f32.gmra.mxu0 %vm1236_vm3, %v4078_v31  ;;  %v1404_v31 = vsub.f32 %v1340_v13, %v1372_v51 }
 0x148   :  { %3384 = vmatprep.mubr.msk.f32.mxu0 %vm1236_vm3, %v4057_v4  ;;  %v1374_v4 = vmul.f32 32.0, %v1266_v47 }
 0x149   :  { %vm1436_vm9 = vcmp.eq.f32.partialorder %v3852_v21, %v1404_v31  ;;  %v1375_v31 = vmul.f32 32.0, %v1269_v57 }
 0x14a   :  { %v4401_v13 = vsel %vm1436_vm9, 1.0, %v5415_v15 }
 0x14b   :  { %3385 = vmatmul.mubr.msk.f32.gmra.mxu0 %vm1236_vm3, %v4032_v46  ;;  %v1342_v46 = vcvt.s32.f32 %v3934_v54  ;;  %5428 = vst [vmem:[#allocation45_spill] sm:$0xff] %v4401_v13 }
 0x14c   :  { %3387 = vmatprep.mubr.msk.f32.mxu0 %vm1236_vm3, %v3856_v23 }
 0x14d   :  { %v1406_v7 = vsub.f32 %v1342_v46, %v1374_v4 }
 0x14f   :  { %3388 = vmatmul.mubr.msk.f32.gmra.mxu0 %vm1236_vm3, %v3987_v12  ;;  %vm1438_vm10 = vcmp.eq.f32.partialorder %v3852_v21, %v1406_v7 }
 0x150   :  { %3442 = vmatprep.mubr.msk.f32.mxu0 %vm1236_vm3, %v4128_v19  ;;  %v4412_v53 = vsel %vm1438_vm10, 1.0, %v5415_v15 }
 0x151   :  { %5429 = vst [vmem:[#allocation46_spill] sm:$0xff] %v4412_v53 }
 0x1cf   :  { %v828_v50 = vpop.f32.mrf.mxu0 }
 0x1d0   :  { %v4376_v36 = vadd.f32 %v2883_v25, %v828_v50  ;;  %v1341_v50 = vcvt.s32.f32 %v3937_v55  ;;  %v1343_v55 = vcvt.s32.f32 %v3914_v45 }
 0x1d1   :  { %v3304_v28 = vpop.f32.mrf.mxu0 }
 0x1d2   :  { %v832_v60 = vmax.f32 %v4376_v36, 0.0  ;;  %v1373_v28 = vmul.f32 32.0, %v1263_v58  ;;  %v4405_v58 = vpop.xlane.xlu0 %1316 }
 0x1d3   :  { %v4382_v12 = vpop.f32.mrf.mxu0 }
 0x1d4   :  { %3338 = vmatmul.mubr.f32.vlgmr.msra.gmra.mxu1 %v832_v60  ;;  %v1344_v60 = vcvt.s32.f32 %v3904_v41  ;;  %v1405_v54 = vsub.f32 %v1341_v50, %v1373_v28  ;;  %v1407_v28 = vsub.f32 %v1343_v55, %v1375_v31  ;;  %v1345_v55 = vcvt.s32.f32 %v3886_v34 }
 0x1d5   :  { %v4384_v23 = vpop.f32.mrf.mxu0  ;;  %v1377_v31 = vmul.f32 32.0, %v4365_v33  ;;  %v1348_v34 = vcvt.s32.f32 %v3977_v8  ;;  %v1380_v33 = vmul.f32 32.0, %v4369_v18 }
 0x1d6   :  { %v1408_v4 = vsub.f32 %v1344_v60, %v1376_v2  ;;  %vm1437_vm11 = vcmp.eq.f32.partialorder %v3852_v21, %v1405_v54  ;;  %v1314_v57 = vpop.xlane.xlu0 %1313  ;;  %v1346_v54 = vcvt.s32.f32 %v3867_v27  ;;  %vm1439_vm13 = vcmp.eq.f32.partialorder %v3852_v21, %v1407_v28 }
 0x1d7   :  { %v4387_v25 = vpop.f32.mrf.mxu0  ;;  %v4416_v45 = vsel %vm1437_vm11, 1.0, %v5415_v15 }
 0x1d8   :  { %5430 = vst [vmem:[#allocation47_spill] sm:$0xff] %v4416_v45  ;;  %vm1440_vm12 = vcmp.eq.f32.partialorder %v3852_v21, %v1408_v4 }
 0x1d9   :  { %v4392_v38 = vpop.f32.mrf.mxu0 }
 0x1db   :  { %v4395_v40 = vpop.f32.mrf.mxu0 }
 0x1dd   :  { %v4398_v47 = vpop.f32.mrf.mxu0 }
 0x1df   :  { %v3353_v46 = vpop.f32.mrf.mxu0 }
 0x1e0   :  { %v1853_v51 = vmul.f32 %v3353_v46, %v4401_v13  ;;  %v1378_v46 = vmul.f32 32.0, %v1278_v62 }
 0x1e1   :  { %v4409_v41 = vpop.f32.mrf.mxu0 }
 0x1e2   :  { %v1899_v50 = vsel %vm758_vm8, %v1853_v51, 0.0 }
 0x1e3   :  { %1900 = vadd.xlane.f32.xlu1 %v1899_v50  ;;  %v3356_v7 = vpop.f32.mrf.mxu0  ;;  %v4424_v50 = vsel %vm1440_vm12, 1.0, %v5415_v15 }
 0x1e4   :  { %v1855_v2 = vmul.f32 %v3356_v7, %v4412_v53  ;;  %5431 = vst [vmem:[#allocation48_spill] sm:$0xff] %v4424_v50  ;;  %v1410_v7 = vsub.f32 %v1346_v54, %v1378_v46  ;;  %v1254_v53 = vpop.xlane.xlu1 %1253  ;;  %v1347_v46 = vcvt.s32.f32 %v3849_v20 }
 0x1e5   :  { %v1727_v60 = vpop.f32.mrf.mxu0  ;;  %v1370_v14 = vmul.f32 32.0, %v1254_v53  ;;  %v5440_v53 = vld [vmem:[#allocation12_spill] sm:$0xff] }
 0x1e6   :  { %v1854_v13 = vmul.f32 %v4416_v45, %v1727_v60  ;;  %v1905_v51 = vsel %vm758_vm8, %v1855_v2, 0.0  ;;  %v1311_v60 = vpop.xlane.xlu0 %1310  ;;  %v4432_v2 = vsel %vm1439_vm13, 1.0, %v5415_v15  ;;  %v1409_v45 = vsub.f32 %v1345_v55, %v1377_v31 }
 0x1e7   :  { %1906 = vadd.xlane.f32.xlu1 %v1905_v51  ;;  %v3359_v44 = vpop.f32.mrf.mxu0  ;;  %5432 = vst [vmem:[#allocation49_spill] sm:$0xff] %v4432_v2  ;;  %vm1442_vm14 = vcmp.eq.f32.partialorder %v3852_v21, %v1410_v7  ;;  %v1379_v55 = vmul.f32 32.0, %v4363_v39  ;;  %v1412_v31 = vsub.f32 %v1348_v34, %v1380_v33  ;;  %v5435_v39 = vld [vmem:[#allocation9_spill] sm:$0xff]  ;;  %v1371_v34 = vmul.f32 32.0, %v1257_v52 }
 0x1e8   :  { %v1857_v27 = vmul.f32 %v3359_v44, %v4424_v50  ;;  %v1902_v62 = vsel %vm758_vm8, %v1854_v13, 0.0  ;;  %v1251_v54 = vpop.xlane.xlu1 %1250  ;;  %vm1441_vm15 = vcmp.eq.f32.partialorder %v3852_v21, %v1409_v45  ;;  %v4443_v18 = vsel %vm1442_vm14, 1.0, %v5415_v15 }
 0x1e9   :  { %v1737_v4 = vpop.f32.mrf.mxu0  ;;  %5433 = vst [vmem:[#allocation50_spill] sm:$0xff] %v4443_v18  ;;  %v4449_v50 = vsel %vm1441_vm15, 1.0, %v5415_v15  ;;  %v1339_v45 = vcvt.s32.f32 %v5435_v39  ;;  %v1411_v33 = vsub.f32 %v1347_v46, %v1379_v55  ;;  %vm1444_vm0 = vcmp.eq.f32.partialorder %v3852_v21, %v1412_v31  ;;  %v5437_v39 = vld [vmem:[#allocation26_spill] sm:$0xff]  ;;  %v5438_v55 = vld [vmem:[#allocation27_spill] sm:$0xff] }
 0x1ea   :  { %v1856_v28 = vmul.f32 %v4432_v2, %v1737_v4  ;;  %v1911_v44 = vsel %vm758_vm8, %v1857_v27, 0.0  ;;  %v1308_v8 = vpop.xlane.xlu0 %1307  ;;  %v5434_v4 = vld [vmem:[#allocation24_spill] sm:$0xff]  ;;  %v1358_v52 = vcvt.s32.f32 %v5437_v39  ;;  %v1390_v46 = vmul.f32 32.0, %v1314_v57 }
 0x1eb   :  { %1903 = vadd.xlane.f32.xlu1 %v1902_v62  ;;  %v3362_v51 = vpop.f32.mrf.mxu0  ;;  %v1356_v2 = vcvt.s32.f32 %v5434_v4  ;;  %v1388_v7 = vmul.f32 32.0, %v1308_v8  ;;  %v1403_v16 = vsub.f32 %v1339_v45, %v1371_v34  ;;  %v1357_v24 = vcvt.s32.f32 %v5438_v55 }
 0x1ec   :  { %v1859_v27 = vmul.f32 %v3362_v51, %v4443_v18  ;;  %v1248_v18 = vpop.xlane.xlu1 %1247  ;;  %vm1443_vm1 = vcmp.eq.f32.partialorder %v3852_v21, %v1411_v33  ;;  %v1337_v45 = vcvt.s32.f32 %v5440_v53  ;;  %v1369_v34 = vmul.f32 32.0, %v1251_v54 }
 0x1ed   :  { %v1747_v22 = vpop.f32.mrf.mxu0  ;;  %v1420_v63 = vsub.f32 %v1356_v2, %v1388_v7  ;;  %v1389_v2 = vmul.f32 32.0, %v1311_v60  ;;  %vm1435_vm4 = vcmp.eq.f32.partialorder %v3852_v21, %v1403_v16  ;;  %v4480_v33 = vsel %vm1443_vm1, 1.0, %v5415_v15  ;;  %v5444_v16 = vld [vmem:[#allocation13_spill] sm:$0xff] }
 0x1ee   :  { %v1858_v4 = vmul.f32 %v4449_v50, %v1747_v22  ;;  %v1917_v51 = vsel %vm758_vm8, %v1859_v27, 0.0  ;;  %v4465_v22 = vsel %vm1444_vm0, 1.0, %v5415_v15  ;;  %5442 = vst [vmem:[#allocation9_spill] sm:$0xff] %v4480_v33  ;;  %v1368_v53 = vmul.f32 32.0, %v1248_v18 }
 0x1ef   :  { %1912 = vadd.xlane.f32.xlu1 %v1911_v44  ;;  %v3365_v13 = vpop.f32.mrf.mxu0  ;;  %v1908_v44 = vsel %vm758_vm8, %v1856_v28, 0.0  ;;  %v5436_v28 = vld [vmem:[#allocation10_spill] sm:$0xff]  ;;  %5439 = vst [vmem:[#allocation24_spill] sm:$0xff] %v4465_v22  ;;  %vm1452_vm2 = vcmp.eq.f32.partialorder %v3852_v21, %v1420_v63  ;;  %v1421_v54 = vsub.f32 %v1357_v24, %v1389_v2 }
 0x1f0   :  { %v1338_v8 = vcvt.s32.f32 %v5436_v28  ;;  %v1861_v7 = vmul.f32 %v3365_v13, %v4465_v22  ;;  %v1914_v27 = vsel %vm758_vm8, %v1858_v4, 0.0  ;;  %v5441_v28 = vld [vmem:[#allocation20_spill] sm:$0xff]  ;;  %v1392_v13 = vmul.f32 32.0, %v4390_v49  ;;  %v1245_v55 = vpop.xlane.xlu1 %1244  ;;  %v5445_v2 = vld [vmem:[#allocation22_spill] sm:$0xff] }
 0x1f1   :  { %v1757_v62 = vpop.f32.mrf.mxu0  ;;  %v1360_v39 = vcvt.s32.f32 %v5441_v28  ;;  %v4485_v63 = vsel %vm1452_vm2, 1.0, %v5415_v15  ;;  %vm1453_vm7 = vcmp.eq.f32.partialorder %v3852_v21, %v1421_v54 }
 0x1f2   :  { %v1402_v60 = vsub.f32 %v1338_v8, %v1370_v14  ;;  %5443 = vst [vmem:[#allocation10_spill] sm:$0xff] %v4485_v63  ;;  %v1923_v14 = vsel %vm758_vm8, %v1861_v7, 0.0  ;;  %v1401_v8 = vsub.f32 %v1337_v45, %v1369_v34  ;;  %v1391_v7 = vmul.f32 32.0, %v4405_v58 }
 0x1f3   :  { %1909 = vadd.xlane.f32.xlu1 %v1908_v44  ;;  %v4451_v20 = vpop.f32.mrf.mxu0  ;;  %v1424_v24 = vsub.f32 %v1360_v39, %v1392_v13 }
 0x1f4   :  { %vm1434_vm5 = vcmp.eq.f32.partialorder %v3852_v21, %v1402_v60  ;;  %v5446_v60 = vld [vmem:[#allocation15_spill] sm:$0xff]  ;;  %v1242_v39 = vpop.xlane.xlu1 %1241  ;;  %vm1433_vm9 = vcmp.eq.f32.partialorder %v3852_v21, %v1401_v8 }
 0x1f5   :  { %v4454_v5 = vpop.f32.mrf.mxu0  ;;  %v4508_v13 = vsel %vm1434_vm5, 1.0, %v5415_v15  ;;  %vm1456_vm10 = vcmp.eq.f32.partialorder %v3852_v21, %v1424_v24  ;;  %v1366_v22 = vmul.f32 32.0, %v1242_v39 }
 0x1f7   :  { %1918 = vadd.xlane.f32.xlu1 %v1917_v51  ;;  %v4460_v44 = vpop.f32.mrf.mxu0  ;;  %v1422_v51 = vsub.f32 %v1358_v52, %v1390_v46  ;;  %v1336_v52 = vcvt.s32.f32 %v5444_v16  ;;  %v4491_v46 = vsel %vm1435_vm4, 1.0, %v5415_v15  ;;  %v1362_v16 = vcvt.s32.f32 %v5446_v60 }
 0x1f8   :  { %v1852_v34 = vmul.f32 %v4491_v46, %v4409_v41  ;;  %v1394_v60 = vmul.f32 32.0, %v4371_v26 }
 0x1f9   :  { %v4467_v31 = vpop.f32.mrf.mxu0  ;;  %vm1454_vm6 = vcmp.eq.f32.partialorder %v3852_v21, %v1422_v51 }
 0x1fa   :  { %v4511_v58 = vsel %vm1454_vm6, 1.0, %v5415_v15 }
 0x1fb   :  { %1915 = vadd.xlane.f32.xlu1 %v1914_v27  ;;  %v4474_v57 = vpop.f32.mrf.mxu0  ;;  %v1860_v27 = vmul.f32 %v4480_v33, %v1757_v62  ;;  %v1359_v62 = vcvt.s32.f32 %v5445_v2  ;;  %5448 = vst [vmem:[#allocation26_spill] sm:$0xff] %v4511_v58  ;;  %v1400_v2 = vsub.f32 %v1336_v52, %v1368_v53  ;;  %v1896_v52 = vsel %vm758_vm8, %v1852_v34, 0.0  ;;  %v5450_v53 = vld [vmem:[#allocation17_spill] sm:$0xff]  ;;  %v1239_v34 = vpop.xlane.xlu1 %1238 }
 0x1fd   :  { %v4482_v4 = vpop.f32.mrf.mxu0  ;;  %vm1432_vm11 = vcmp.eq.f32.partialorder %v3852_v21, %v1400_v2 }
 0x1ff   :  { %1924 = vadd.xlane.f32.xlu1 %v1923_v14  ;;  %v3377_v49 = vpop.f32.mrf.mxu0  ;;  %v1920_v14 = vsel %vm758_vm8, %v1860_v27, 0.0  ;;  %v1367_v27 = vmul.f32 32.0, %v1245_v55  ;;  %v1851_v55 = vmul.f32 %v4395_v40, %v4508_v13  ;;  %v1426_v40 = vsub.f32 %v1362_v16, %v1394_v60  ;;  %v5453_v16 = vld [vmem:[#allocation11_spill] sm:$0xff] }
 0x200   :  { %v1869_v28 = vmul.f32 %v3377_v49, %v4485_v63  ;;  %v5447_v49 = vld [vmem:[#allocation16_spill] sm:$0xff]  ;;  %v1423_v63 = vsub.f32 %v1359_v62, %v1391_v7  ;;  %v1361_v62 = vcvt.s32.f32 %v5450_v53  ;;  %v4531_v7 = vsel %vm1433_vm9, 1.0, %v5415_v15 }
 0x201   :  { %v4498_v45 = vpop.f32.mrf.mxu0  ;;  %v1335_v51 = vcvt.s32.f32 %v5447_v49  ;;  %v4516_v49 = vpop.xlane.xlu0 %1304  ;;  %v1893_v39 = vsel %vm758_vm8, %v1851_v55, 0.0  ;;  %v1364_v2 = vcvt.s32.f32 %v5453_v16  ;;  %vm1458_vm14 = vcmp.eq.f32.partialorder %v3852_v21, %v1426_v40 }
 0x202   :  { %v1947_v18 = vsel %vm758_vm8, %v1869_v28, 0.0  ;;  %vm1455_vm12 = vcmp.eq.f32.partialorder %v3852_v21, %v1423_v63  ;;  %v5456_v63 = vld [vmem:[#allocation7_spill] sm:$0xff]  ;;  %v1395_v40 = vmul.f32 32.0, %v4361_v9 }
 0x203   :  { %1921 = vadd.xlane.f32.xlu1 %v1920_v14  ;;  %1948 = vadd.xlane.f32.xlu0 %v1947_v18  ;;  %v3380_v41 = vpop.f32.mrf.mxu0  ;;  %v4521_v14 = vsel %vm1453_vm7, 1.0, %v5415_v15 }
 0x204   :  { %v1871_v28 = vmul.f32 %v3380_v41, %v4511_v58  ;;  %5449 = vst [vmem:[#allocation27_spill] sm:$0xff] %v4521_v14  ;;  %v1399_v41 = vsub.f32 %v1335_v51, %v1367_v27  ;;  %v5451_v58 = vld [vmem:[#allocation19_spill] sm:$0xff] }
 0x205   :  { %v1807_v18 = vpop.f32.mrf.mxu0  ;;  %v1334_v33 = vcvt.s32.f32 %v5451_v58  ;;  %v1302_v27 = vpop.xlane.xlu0 %1301 }
 0x206   :  { %v1870_v8 = vmul.f32 %v4521_v14, %v1807_v18  ;;  %v1953_v26 = vsel %vm758_vm8, %v1871_v28, 0.0  ;;  %v1393_v18 = vmul.f32 32.0, %v4380_v1  ;;  %v4539_v28 = vsel %vm1456_vm10, 1.0, %v5415_v15 }
 0x207   :  { %1897 = vadd.xlane.f32.xlu1 %v1896_v52  ;;  %1954 = vadd.xlane.f32.xlu0 %v1953_v26  ;;  %v3383_v54 = vpop.f32.mrf.mxu0  ;;  %5452 = vst [vmem:[#allocation12_spill] sm:$0xff] %v4539_v28  ;;  %v1850_v52 = vmul.f32 %v4531_v7, %v4398_v47  ;;  %v4549_v1 = vsel %vm1432_vm11, 1.0, %v5415_v15  ;;  %v1398_v60 = vsub.f32 %v1334_v33, %v1366_v22  ;;  %v5454_v26 = vld [vmem:[#allocation6_spill] sm:$0xff]  ;;  %v1365_v14 = vmul.f32 32.0, %v1239_v34 }
 0x208   :  { %v1873_v51 = vmul.f32 %v3383_v54, %v4539_v28  ;;  %v1950_v58 = vsel %vm758_vm8, %v1870_v8, 0.0  ;;  %v1333_v53 = vcvt.s32.f32 %v5454_v26  ;;  %vm1431_vm13 = vcmp.eq.f32.partialorder %v3852_v21, %v1399_v41 }
 0x209   :  { %v1817_v24 = vpop.f32.mrf.mxu0  ;;  %v1396_v47 = vmul.f32 32.0, %v4367_v6  ;;  %v1425_v55 = vsub.f32 %v1361_v62, %v1393_v18  ;;  %v4557_v8 = vsel %vm1455_vm12, 1.0, %v5415_v15  ;;  %v1849_v54 = vmul.f32 %v4387_v25, %v4549_v1 }
 0x20a   :  { %5455 = vst [vmem:[#allocation20_spill] sm:$0xff] %v4557_v8  ;;  %v1872_v22 = vmul.f32 %v4557_v8, %v1817_v24  ;;  %v1890_v33 = vsel %vm758_vm8, %v1850_v52, 0.0  ;;  %v1959_v34 = vsel %vm758_vm8, %v1873_v51, 0.0  ;;  %v4566_v41 = vsel %vm1431_vm13, 1.0, %v5415_v15 }
 0x20b   :  { %1894 = vadd.xlane.f32.xlu1 %v1893_v39  ;;  %1951 = vadd.xlane.f32.xlu0 %v1950_v58  ;;  %v3386_v6 = vpop.f32.mrf.mxu0  ;;  %v1363_v62 = vcvt.s32.f32 %v5456_v63  ;;  %v1397_v18 = vsub.f32 %v1333_v53, %v1365_v14  ;;  %vm1430_vm15 = vcmp.eq.f32.partialorder %v3852_v21, %v1398_v60  ;;  %v1428_v25 = vsub.f32 %v1364_v2, %v1396_v47  ;;  %v1299_v39 = vpop.xlane.xlu0 %1298  ;;  %v5458_v2 = vld [vmem:[#allocation25_spill] sm:$0xff] }
 0x20c   :  { %v4572_v58 = vsel %vm1458_vm14, 1.0, %v5415_v15  ;;  %vm1457_vm0 = vcmp.eq.f32.partialorder %v3852_v21, %v1425_v55  ;;  %v1848_v52 = vmul.f32 %v4566_v41, %v4392_v38  ;;  %v1887_v16 = vsel %vm758_vm8, %v1849_v54, 0.0 }
 0x20d   :  { %5457 = vst [vmem:[#allocation13_spill] sm:$0xff] %v4572_v58  ;;  %v1875_v51 = vmul.f32 %v3386_v6, %v4572_v58  ;;  %v1956_v14 = vsel %vm758_vm8, %v1872_v22, 0.0  ;;  %v4581_v24 = vsel %vm1430_vm15, 1.0, %v5415_v15  ;;  %v1827_v9 = vpop.f32.mrf.mxu0  ;;  %vm1429_vm1 = vcmp.eq.f32.partialorder %v3852_v21, %v1397_v18  ;;  %v4737_v58 = vld [vmem:[%s5283_s7 + $0x60] sm:$0xff] }
 0x20e   :  { %v1355_v60 = vcvt.s32.f32 %v5458_v2  ;;  %v1387_v53 = vmul.f32 32.0, %v4516_v49  ;;  %v1427_v47 = vsub.f32 %v1363_v62, %v1395_v40  ;;  %v4587_v38 = vsel %vm1457_vm0, 1.0, %v5415_v15  ;;  %v5460_v62 = vld [vmem:[#allocation28_spill] sm:$0xff] }
 0x20f   :  { %1891 = vadd.xlane.f32.xlu1 %v1890_v33  ;;  %1960 = vadd.xlane.f32.xlu0 %v1959_v34  ;;  %5459 = vst [vmem:[#allocation22_spill] sm:$0xff] %v4587_v38  ;;  %vm1460_vm2 = vcmp.eq.f32.partialorder %v3852_v21, %v1428_v25  ;;  %v1847_v55 = vmul.f32 %v4382_v12, %v4581_v24  ;;  %v1884_v22 = vsel %vm758_vm8, %v1848_v52, 0.0  ;;  %v1965_v33 = vsel %vm758_vm8, %v1875_v51, 0.0  ;;  %v1296_v6 = vpop.xlane.xlu0 %1295  ;;  %v3389_v49 = vpop.f32.mrf.mxu0  ;;  %v5462_v2 = vld [vmem:[#allocation32_spill] sm:$0xff] }
 0x210   :  { %v1874_v54 = vmul.f32 %v4587_v38, %v1827_v9  ;;  %v4596_v34 = vsel %vm1429_vm1, 1.0, %v5415_v15  ;;  %v1419_v63 = vsub.f32 %v1355_v60, %v1387_v53  ;;  %v1354_v18 = vcvt.s32.f32 %v5460_v62  ;;  %v4720_v38 = vld [vmem:[%s5283_s7 + $0xe8] sm:$0xff]  ;;  %5476 = vst [vmem:[#allocation32_spill] sm:$0xff] %v4737_v58 }
 0x211   :  { %v1386_v40 = vmul.f32 32.0, %v1302_v27  ;;  %v4600_v25 = vsel %vm1460_vm2, 1.0, %v5415_v15  ;;  %vm1459_vm4 = vcmp.eq.f32.partialorder %v3852_v21, %v1427_v47  ;;  %v1846_v12 = vmul.f32 %v4596_v34, %v4384_v23  ;;  %5473 = vst [vmem:[#allocation7_spill] sm:$0xff] %v4720_v38 }
 0x212   :  { %5461 = vst [vmem:[#allocation15_spill] sm:$0xff] %v4600_v25  ;;  %v1877_v52 = vmul.f32 %v3389_v49, %v4600_v25  ;;  %v1881_v51 = vsel %vm758_vm8, %v1847_v55, 0.0  ;;  %v1353_v27 = vcvt.s32.f32 %v5462_v2  ;;  %v1385_v60 = vmul.f32 32.0, %v1299_v39  ;;  %v5464_v49 = vld [vmem:[#allocation34_spill] sm:$0xff] }
 0x213   :  { %1888 = vadd.xlane.f32.xlu1 %v1887_v16  ;;  %1957 = vadd.xlane.f32.xlu0 %v1956_v14  ;;  %v1962_v16 = vsel %vm758_vm8, %v1874_v54, 0.0  ;;  %v1837_v14 = vpop.f32.mrf.mxu0  ;;  %v1418_v9 = vsub.f32 %v1354_v18, %v1386_v40  ;;  %vm1451_vm5 = vcmp.eq.f32.partialorder %v3852_v21, %v1419_v63  ;;  %v1293_v53 = vpop.xlane.xlu0 %1292  ;;  %v4611_v47 = vsel %vm1459_vm4, 1.0, %v5415_v15  ;;  %v4715_v25 = vld [vmem:[%s5283_s7 + $0x70] sm:$0xff] }
 0x214   :  { %5463 = vst [vmem:[#allocation16_spill] sm:$0xff] %v4611_v47  ;;  %v1876_v23 = vmul.f32 %v4611_v47, %v1837_v14  ;;  %v1971_v55 = vsel %vm758_vm8, %v1877_v52, 0.0  ;;  %v4617_v54 = vsel %vm1451_vm5, 1.0, %v5415_v15  ;;  %v1352_v39 = vcvt.s32.f32 %v5464_v49  ;;  %v5467_v49 = vld [vmem:[#allocation40_spill] sm:$0xff]  ;;  %v4696_v47 = vld [vmem:[%s5283_s7 + $0xf8] sm:$0xff]  ;;  %5472 = vst [vmem:[#allocation6_spill] sm:$0xff] %v4715_v25 }
 0x215   :  { %v1384_v62 = vmul.f32 32.0, %v1296_v6  ;;  %vm1450_vm6 = vcmp.eq.f32.partialorder %v3852_v21, %v1418_v9  ;;  %v1868_v63 = vmul.f32 %v4617_v54, %v4498_v45  ;;  %v1383_v14 = vmul.f32 32.0, %v1293_v53  ;;  %5469 = vst [vmem:[#allocation17_spill] sm:$0xff] %v4696_v47 }
 0x216   :  { %v1968_v18 = vsel %vm758_vm8, %v1876_v23, 0.0 }
 0x217   :  { %1885 = vadd.xlane.f32.xlu1 %v1884_v22  ;;  %1966 = vadd.xlane.f32.xlu0 %v1965_v33  ;;  %v1878_v22 = vsel %vm758_vm8, %v1846_v12, 0.0  ;;  %v1417_v33 = vsub.f32 %v1353_v27, %v1385_v60  ;;  %v1290_v40 = vpop.xlane.xlu0 %1289  ;;  %v4625_v12 = vsel %vm1450_vm6, 1.0, %v5415_v15  ;;  %v1416_v52 = vsub.f32 %v1352_v39, %v1384_v62  ;;  %v5466_v27 = vld [vmem:[#allocation38_spill] sm:$0xff] }
 0x218   :  { %v1867_v6 = vmul.f32 %v4474_v57, %v4625_v12  ;;  %v1944_v9 = vsel %vm758_vm8, %v1868_v63, 0.0  ;;  %v1350_v60 = vcvt.s32.f32 %v5466_v27  ;;  %v1382_v23 = vmul.f32 32.0, %v1290_v40  ;;  %v5468_v27 = vld [vmem:[#allocation5_spill] sm:$0xff] }
 0x219   :  { %vm1449_vm7 = vcmp.eq.f32.partialorder %v3852_v21, %v1417_v33  ;;  %vm1448_vm9 = vcmp.eq.f32.partialorder %v3852_v21, %v1416_v52  ;;  %v1349_v39 = vcvt.s32.f32 %v5467_v49  ;;  %vm928_vm0 = vcmp.eq.s32.totalorder %v5468_v27, 0 }
 0x21a   :  { %v4633_v45 = vsel %vm1449_vm7, 1.0, %v5415_v15  ;;  %v4641_v57 = vsel %vm1448_vm9, 1.0, %v5415_v15  ;;  %v1414_v33 = vsub.f32 %v1350_v60, %v1382_v23  ;;  %v5358_v60 = vmul.u32 32, %v5454_v26 }
 0x21b   :  { %1882 = vadd.xlane.f32.xlu1 %v1881_v51  ;;  %1963 = vadd.xlane.f32.xlu0 %v1962_v16  ;;  %v5465_v51 = vld [vmem:[#allocation36_spill] sm:$0xff]  ;;  %v1866_v53 = vmul.f32 %v4633_v45, %v4482_v4  ;;  %v1865_v63 = vmul.f32 %v4460_v44, %v4641_v57  ;;  %vm2789_vm5 = vcmp.eq.s32.totalorder %v5468_v27, 20 }
 0x21c   :  { %v1351_v16 = vcvt.s32.f32 %v5465_v51  ;;  %vm1446_vm11 = vcmp.eq.f32.partialorder %v3852_v21, %v1414_v33 }
 0x21d   :  { %v1935_v51 = vsel %vm758_vm8, %v1865_v63, 0.0  ;;  %v2885_v63 = vld [vmem:[%s5282_s6] ss:$0 sm:$0xff] }
 0x21e   :  { %v1415_v2 = vsub.f32 %v1351_v16, %v1383_v14  ;;  %v4656_v16 = vsel %vm1446_vm11, 1.0, %v5415_v15 }
 0x21f   :  { %1879 = vadd.xlane.f32.xlu1 %v1878_v22  ;;  %1972 = vadd.xlane.f32.xlu0 %v1971_v55  ;;  %v1287_v22 = vpop.xlane.xlu0 %1286  ;;  %v1941_v55 = vsel %vm758_vm8, %v1867_v6, 0.0  ;;  %v1863_v44 = vmul.f32 %v4451_v20, %v4656_v16 }
 0x220   :  { %v1381_v62 = vmul.f32 32.0, %v1287_v22  ;;  %vm1447_vm10 = vcmp.eq.f32.partialorder %v3852_v21, %v1415_v2 }
 0x221   :  { %v4649_v40 = vsel %vm1447_vm10, 1.0, %v5415_v15 }
 0x222   :  { %v1413_v4 = vsub.f32 %v1349_v39, %v1381_v62  ;;  %v1864_v52 = vmul.f32 %v4649_v40, %v4467_v31 }
 0x223   :  { %1969 = vadd.xlane.f32.xlu0 %v1968_v18  ;;  %v1938_v18 = vsel %vm758_vm8, %v1866_v53, 0.0 }
 0x224   :  { %vm1445_vm12 = vcmp.eq.f32.partialorder %v3852_v21, %v1413_v4  ;;  %v1932_v14 = vsel %vm758_vm8, %v1864_v52, 0.0  ;;  %v1189_v21 = vadd.s32 128, %v5468_v27 }
 0x225   :  { %v4663_v6 = vsel %vm1445_vm12, 1.0, %v5415_v15  ;;  %v5357_v15 = vmov 1.0  }
 0x226   :  { %v1862_v31 = vmul.f32 %v4663_v6, %v4454_v5  ;;  %v1192_v20 = vsub.s32 %v1189_v21, %v5358_v60 }
 0x227   :  { %1945 = vadd.xlane.f32.xlu0 %v1944_v9  ;;  %v1929_v9 = vsel %vm758_vm8, %v1863_v44, 0.0 }
 0x228   :  { %v1926_v2 = vsel %vm758_vm8, %v1862_v31, 0.0  ;;  %vm1194_vm13 = vcmp.ge.s32.totalorder %v1192_v20, 0  ;;  %vm1196_vm14 = vcmp.lt.s32.totalorder %v1192_v20, 32 }
 0x229   :  { %vm1198_vm15 = vmand %vm1194_vm13, %vm1196_vm14 }
 0x22a   :  { %2984 = vmatprep.mubr.msk.f32.mxu1 %vm1198_vm15, %v5357_v15 }
 0x22b   :  { %1942 = vadd.xlane.f32.xlu0 %v1941_v55 }
 0x22f   :  { %1939 = vadd.xlane.f32.xlu0 %v1938_v18 }
 0x233   :  { %1936 = vadd.xlane.f32.xlu0 %v1935_v51  ;;  %v929_v51 = vsel %vm928_vm0, %v4376_v36, 0.0  ;;  %v4701_v36 = vld [vmem:[%s5283_s7 + $0x78] sm:$0xff] }
 0x234   :  { %5470 = vst [vmem:[#allocation19_spill] sm:$0xff] %v4701_v36 }
 0x237   :  { %1933 = vadd.xlane.f32.xlu0 %v1932_v14 }
 0x23b   :  { %1930 = vadd.xlane.f32.xlu0 %v1929_v9 }
 0x23f   :  { %1927 = vadd.xlane.f32.xlu0 %v1926_v2 }
 0x26c   :  { %v4674_v5 = vpop.xlane.xlu1 %1900 }
 0x270   :  { %v4676_v23 = vpop.xlane.xlu1 %1906 }
 0x274   :  { %v4678_v22 = vpop.xlane.xlu1 %1903 }
 0x278   :  { %v1913_v53 = vpop.xlane.xlu1 %1912 }
 0x27c   :  { %v1910_v55 = vpop.xlane.xlu1 %1909 }
 0x280   :  { %v1919_v33 = vpop.xlane.xlu1 %1918 }
 0x284   :  { %v1916_v62 = vpop.xlane.xlu1 %1915 }
 0x288   :  { %v1925_v31 = vpop.xlane.xlu1 %1924 }
 0x28c   :  { %v4680_v49 = vpop.xlane.xlu0 %1948  ;;  %v1922_v21 = vpop.xlane.xlu1 %1921 }
 0x290   :  { %v1955_v39 = vpop.xlane.xlu0 %1954  ;;  %v4691_v15 = vpop.xlane.xlu1 %1897 }
 0x294   :  { %v922_v18 = vpop.f32.mrf.mxu1  ;;  %v4686_v52 = vpop.xlane.xlu0 %1951 }
 0x295   :  { %v923_v4 = vadd.f32 %v2885_v63, %v922_v18  ;;  %v4703_v18 = vpop.xlane.xlu1 %1894 }
 0x296   :  { %v3339_v44 = vpop.f32.mrf.mxu1 }
 0x297   :  { %v4689_v14 = vadd.f32 %v929_v51, %v923_v4  ;;  %v1989_v51 = vmul.f32 %v1925_v31, %v4701_v36  ;;  %v4710_v44 = vld [vmem:[%s5283_s7 + $0xf0] sm:$0xff]  ;;  %v4725_v31 = vld [vmem:[%s5283_s7 + $0x68] sm:$0xff]  ;;  %v1988_v36 = vmul.f32 %v1922_v21, %v4715_v25  ;;  %v4746_v21 = vld [vmem:[%s5283_s7 + $0xd8] sm:$0xff] }
 0x298   :  { %v1961_v9 = vpop.xlane.xlu0 %1960  ;;  %5471 = vst [vmem:[#allocation11_spill] sm:$0xff] %v4710_v44  ;;  %5474 = vst [vmem:[#allocation25_spill] sm:$0xff] %v4725_v31  ;;  %v1987_v28 = vmul.f32 %v1919_v33, %v4725_v31  ;;  %v4763_v33 = vld [vmem:[%s5283_s7 + $0x50] sm:$0xff] }
 0x299   :  { %5477 = vst [vmem:[#allocation34_spill] sm:$0xff] %v4746_v21  ;;  %5480 = vst [vmem:[#allocation40_spill] sm:$0xff] %v4763_v33 }
 0x29c   :  { %v1958_v2 = vpop.xlane.xlu0 %1957 }
 0x2a0   :  { %v1967_v20 = vpop.xlane.xlu0 %1966 }
 0x2a1   :  { %v2003_v8 = vmul.f32 %v1967_v20, %v4720_v38  ;;  %v1986_v20 = vmul.f32 %v1916_v62, %v4737_v58 }
 0x2a4   :  { %v1964_v60 = vpop.xlane.xlu0 %1963 }
 0x2a8   :  { %v1973_v63 = vpop.xlane.xlu0 %1972 }
 0x2a9   :  { %v2005_v4 = vmul.f32 %v1973_v63, %v4696_v47 }
 0x2ab   :  { %3193 = vmatprep.subr.mxu1 %v2005_v4  ;;  %v4732_v4 = vld [vmem:[%s5283_s7 + $0xe0] sm:$0xff] }
 0x2ac   :  { %3194 = vmatpush3.msra.mxu1 %v1989_v51  ;;  %v1970_v63 = vpop.xlane.xlu0 %1969  ;;  %5475 = vst [vmem:[#allocation28_spill] sm:$0xff] %v4732_v4  ;;  %v4739_v51 = vpop.xlane.xlu1 %1891  ;;  %v2002_v25 = vmul.f32 %v1964_v60, %v4732_v4 }
 0x2ad   :  { %v2004_v47 = vmul.f32 %v1970_v63, %v4710_v44  ;;  %v4751_v44 = vld [vmem:[%s5283_s7 + $0x58] sm:$0xff] }
 0x2ae   :  { %5478 = vst [vmem:[#allocation36_spill] sm:$0xff] %v4751_v44  ;;  %v1985_v38 = vmul.f32 %v1913_v53, %v4751_v44  ;;  %v4782_v53 = vld [vmem:[%s5283_s7 + $0xc0] sm:$0xff] }
 0x2af   :  { %3195 = vmatprep.subr.mxu1 %v2004_v47  ;;  %v4758_v47 = vld [vmem:[%s5283_s7 + $0xd0] sm:$0xff]  ;;  %5482 = vst [vmem:[#allocation51_spill] sm:$0xff] %v4782_v53 }
 0x2b0   :  { %3196 = vmatpush3.msra.mxu1 %v1988_v36  ;;  %v1946_v63 = vpop.xlane.xlu0 %1945  ;;  %5479 = vst [vmem:[#allocation38_spill] sm:$0xff] %v4758_v47  ;;  %v2001_v36 = vmul.f32 %v1961_v9, %v4746_v21  ;;  %v1889_v62 = vpop.xlane.xlu1 %1888  ;;  %v2000_v4 = vmul.f32 %v1958_v2, %v4758_v47  ;;  %v4787_v9 = vld [vmem:[%s5283_s7 + $0x40] sm:$0xff]  ;;  %v1998_v47 = vmul.f32 %v4686_v52, %v4782_v53 }
 0x2b1   :  { %3197 = vmatprep.subr.mxu1 %v2003_v8  ;;  %v4770_v8 = vld [vmem:[%s5283_s7 + $0xc8] sm:$0xff] }
 0x2b2   :  { %3198 = vmatpush3.msra.mxu1 %v1987_v28  ;;  %5481 = vst [vmem:[#allocation5_spill] sm:$0xff] %v4770_v8  ;;  %v4775_v28 = vld [vmem:[%s5283_s7 + $0x48] sm:$0xff] }
 0x2b3   :  { %3199 = vmatprep.subr.mxu1 %v2002_v25  ;;  %v1984_v25 = vmul.f32 %v1910_v55, %v4763_v33  ;;  %v1983_v2 = vmul.f32 %v4676_v23, %v4775_v28  ;;  %v4795_v55 = vld [vmem:[%s5283_s7 + $0xb8] sm:$0xff]  ;;  %v4809_v23 = vld [vmem:[%s5283_s7 + $0xb0] sm:$0xff] }
 0x2b4   :  { %3200 = vmatpush3.msra.mxu1 %v1986_v20  ;;  %v1943_v60 = vpop.xlane.xlu0 %1942  ;;  %v1999_v20 = vmul.f32 %v1955_v39, %v4770_v8  ;;  %5483 = vst [vmem:[#allocation52_spill] sm:$0xff] %v4795_v55  ;;  %v1982_v39 = vmul.f32 %v4678_v22, %v4787_v9  ;;  %5484 = vst [vmem:[#allocation53_spill] sm:$0xff] %v4809_v23  ;;  %v1886_v21 = vpop.xlane.xlu1 %1885  ;;  %v4823_v22 = vld [vmem:[%s5283_s7 + $0xa8] sm:$0xff] }
 0x2b5   :  { %3201 = vmatprep.subr.mxu1 %v2001_v36  ;;  %5485 = vst [vmem:[#allocation54_spill] sm:$0xff] %v4823_v22  ;;  %v1995_v53 = vmul.f32 %v1943_v60, %v4823_v22  ;;  %v5492_v22 = vmov 1.0  }
 0x2b6   :  { %3202 = vmatpush3.msra.mxu1 %v1985_v38  ;;  %v4800_v38 = vld [vmem:[%s5283_s7 + $0x38] sm:$0xff] }
 0x2b7   :  { %3203 = vmatprep.subr.mxu1 %v2000_v4  ;;  %v1997_v4 = vmul.f32 %v4680_v49, %v4795_v55  ;;  %v1981_v52 = vmul.f32 %v4674_v5, %v4800_v38  ;;  %v4828_v49 = vld [vmem:[%s5283_s7 + $0x28] sm:$0xff]  ;;  %v4836_v5 = vld [vmem:[%s5283_s7 + $0xa0] sm:$0xff] }
 0x2b8   :  { %3204 = vmatpush3.msra.mxu1 %v1984_v25  ;;  %v1940_v36 = vpop.xlane.xlu0 %1939  ;;  %v4816_v25 = vld [vmem:[%s5283_s7 + $0x30] sm:$0xff]  ;;  %5486 = vst [vmem:[#allocation55_spill] sm:$0xff] %v4836_v5  ;;  %v1883_v8 = vpop.xlane.xlu1 %1882  ;;  %v4877_v55 = vld [vmem:[%s5283_s7 + $0x88] sm:$0xff] }
 0x2b9   :  { %3205 = vmatprep.subr.mxu1 %v1999_v20  ;;  %5490 = vst [vmem:[#allocation58_spill] sm:$0xff] %v4877_v55 }
 0x2ba   :  { %3206 = vmatpush3.msra.mxu1 %v1983_v2  ;;  %v1996_v2 = vmul.f32 %v1946_v63, %v4809_v23  ;;  %v1979_v63 = vmul.f32 %v4703_v18, %v4828_v49  ;;  %v1994_v23 = vmul.f32 %v1940_v36, %v4836_v5  ;;  %v4862_v18 = vld [vmem:[%s5283_s7 + $0x90] sm:$0xff]  ;;  %v5489_v36 = vmul.u32 32, %v5454_v26  ;;  %v4882_v5 = vld [vmem:[%s5283_s7 + $0x8] sm:$0xff] }
 0x2bb   :  { %3207 = vmatprep.subr.mxu1 %v1998_v47  ;;  %v1980_v47 = vmul.f32 %v4691_v15, %v4816_v25  ;;  %v4849_v15 = vld [vmem:[%s5283_s7 + $0x98] sm:$0xff]  ;;  %5488 = vst [vmem:[#allocation57_spill] sm:$0xff] %v4862_v18 }
 0x2bc   :  { %3208 = vmatpush3.msra.mxu1 %v1982_v39  ;;  %v1937_v20 = vpop.xlane.xlu0 %1936  ;;  %v4841_v39 = vld [vmem:[%s5283_s7 + $0x20] sm:$0xff]  ;;  %5487 = vst [vmem:[#allocation56_spill] sm:$0xff] %v4849_v15 }
 0x2bd   :  { %3209 = vmatprep.subr.mxu1 %v1997_v4  ;;  %v1978_v60 = vmul.f32 %v4739_v51, %v4841_v39 }
 0x2be   :  { %3210 = vmatpush3.msra.mxu1 %v1981_v52  ;;  %v4854_v52 = vld [vmem:[%s5283_s7 + $0x18] sm:$0xff] }
 0x2bf   :  { %3211 = vmatprep.subr.mxu1 %v1996_v2  ;;  %v4867_v2 = vld [vmem:[%s5283_s7 + $0x10] sm:$0xff]  ;;  %v1977_v51 = vmul.f32 %v1889_v62, %v4854_v52  ;;  %v4889_v62 = vld [vmem:[%s5283_s7 + $0x80] sm:$0xff] }
 0x2c0   :  { %3212 = vmatpush3.msra.mxu1 %v1980_v47  ;;  %v1934_v4 = vpop.xlane.xlu0 %1933  ;;  %v1993_v47 = vmul.f32 %v1937_v20, %v4849_v15  ;;  %v1976_v26 = vmul.f32 %v1886_v21, %v4867_v2  ;;  %5491 = vst [vmem:[#allocation59_spill] sm:$0xff] %v4889_v62  ;;  %v4894_v20 = vld [vmem:[%s5283_s7] sm:$0xff]  ;;  %s3587_s7 = smov [#allocation2]  }
 0x2c1   :  { %3213 = vmatprep.subr.mxu1 %v1995_v53  ;;  %v1191_v53 = vsub.s32 %v5468_v27, %v5489_v36  ;;  %v5507_v15 = vld [vmem:[#allocation8_spill] sm:$0xff]  ;;  %s2798_s15 = sshll.u32 %s3587_s7, 4  ;;  %s2799_s15 = int_to_ptr.vmem [resolvable:$true] %s2798_s15 }
 0x2c2   :  { %3214 = vmatpush3.msra.mxu1 %v1979_v63  ;;  %s3562_s16 = scalar_lea.vmem %s2799_s15, 128  ;;  %p3567_p1 = scmp.lt.s32.totalorder %s2799_s15, %s2799_s15 }
 0x2c3   :  { %3215 = vmatprep.subr.mxu1 %v1994_v23  ;;  %v1992_v23 = vmul.f32 %v1934_v4, %v4862_v18  ;;  %vm1193_vm1 = vcmp.ge.s32.totalorder %v1191_v53, 0  ;;  %vm1195_vm2 = vcmp.lt.s32.totalorder %v1191_v53, 32  ;;  %v1975_v4 = vmul.f32 %v1883_v8, %v4882_v5  ;;  %v5506_v18 = vld [vmem:[#allocation18_spill] sm:$0xff]  ;;  %p3563_p0 = scmp.ne.s32.totalorder %s2799_s15, %s3562_s16  ;;  %p3568_p2 = scmp.lt.s32.totalorder %s3562_s16, %s3562_s16 }
 0x2c4   :  { %3216 = vmatpush3.msra.mxu1 %v1978_v60  ;;  %v1931_v63 = vpop.xlane.xlu0 %1930  ;;  %v1880_v60 = vpop.xlane.xlu1 %1879  ;;  %vm1197_vm4 = vmand %vm1193_vm1, %vm1195_vm2 }
 0x2c5   :  { %3217 = vmatprep.subr.mxu1 %v1993_v47  ;;  %v1991_v36 = vmul.f32 %v1931_v63, %v4877_v55  ;;  %p3569_p3 = por %p3568_p2, %p3567_p1 }
 0x2c6   :  { %3218 = vmatpush3.msra.mxu1 %v1977_v51  ;;  %v1974_v51 = vmul.f32 %v1880_v60, %v4894_v20  ;;  %v5496_v60 = vld [vmem:[#allocation41_spill] sm:$0xff] }
 0x2c7   :  { %3219 = vmatprep.subr.mxu1 %v1992_v23  ;;  %p3570_p4 = pnand %p3569_p3, %p3563_p0 }
 0x2c8   :  { %3220 = vmatpush3.msra.mxu1 %v1976_v26  ;;  %v1928_v21 = vpop.xlane.xlu0 %1927 }
 0x2c9   :  { %v1990_v47 = vmul.f32 %v1928_v21, %v4889_v62  ;;  %3221 = vmatprep.subr.mxu1 %v1991_v36  ;;  %v5497_v36 = vld [vmem:[#allocation39_spill] sm:$0xff]  ;;  %v5508_v62 = vld [vmem:[#allocation14_spill] sm:$0xff] }
 0x2ca   :  { %3222 = vmatpush3.msra.mxu1 %v1975_v4  ;;  %v5498_v4 = vld [vmem:[#allocation37_spill] sm:$0xff]  ;;  %v5499_v21 = vld [vmem:[#allocation35_spill] sm:$0xff] }
 0x2cb   :  { %3223 = vmatprep.subr.mxu1 %v1990_v47  ;;  %v5500_v47 = vld [vmem:[#allocation33_spill] sm:$0xff] }
 0x2cc   :  { %3224 = vmatpush3.msra.mxu1 %v1974_v51  ;;  %v5501_v51 = vld [vmem:[#allocation31_spill] sm:$0xff] }
 0x2cd   :  { %2985 = vmatmul.mubr.msk.f32.vlgmr.msra.gmra.mxu1 %vm1197_vm4, %v5492_v22  ;;  %v5495_v22 = vld [vmem:[#allocation42_spill] sm:$0xff] }
 0x2ce   :  { %3392 = vmatprep.mubr.msk.f32.mxu1 %vm1236_vm3, %v4128_v19  ;;  %v5493_v19 = vld [vmem:[#allocation44_spill] sm:$0xff] }
 0x38d   :  { %v3225_v63 = vpop.f32.mrf.mxu1 }
 0x38f   :  { %v3226_v53 = vpop.f32.mrf.mxu1 }
 0x390   :  { %v3227_v23 = vadd.f32 %v3226_v53, %v3225_v63  ;;  %v5502_v63 = vld [vmem:[#allocation30_spill] sm:$0xff]  ;;  %v5503_v53 = vld [vmem:[#allocation29_spill] sm:$0xff] }
 0x392   :  { %3390 = vmatprep.subr.mxu1 %v3227_v23  ;;  %v2076_v8 = vmul.f32 %v3227_v23, %v4278_v17  ;;  %v5494_v17 = vld [vmem:[#allocation43_spill] sm:$0xff] }
 0x393   :  { %3391 = vmatpush3.msra.mxu1 %v3227_v23 }
 0x394   :  { %3393 = vmatmul.mubr.msk.f32.vlgmr.msra.gmra.mxu1 %vm1236_vm3, %v4106_v61  ;;  %v2077_v26 = vsel %vm758_vm8, %v2076_v8, 0.0  ;;  %v5504_v8 = vld [vmem:[#allocation23_spill] sm:$0xff] }
 0x395   :  { %2078 = vadd.xlane.f32.xlu0 %v2077_v26  ;;  %3395 = vmatprep.mubr.msk.f32.mxu1 %vm1236_vm3, %v4084_v35  ;;  %v5505_v26 = vld [vmem:[#allocation21_spill] sm:$0xff] }
 0x398   :  { %3396 = vmatmul.mubr.msk.f32.gmra.mxu1 %vm1236_vm3, %v4066_v11 }
 0x399   :  { %3398 = vmatprep.mubr.msk.f32.mxu1 %vm1236_vm3, %v4048_v59 }
 0x39c   :  { %3399 = vmatmul.mubr.msk.f32.gmra.mxu1 %vm1236_vm3, %v4028_v43 }
 0x39d   :  { %3401 = vmatprep.mubr.msk.f32.mxu1 %vm1236_vm3, %v4007_v29 }
 0x3a0   :  { %3402 = vmatmul.mubr.msk.f32.gmra.mxu1 %vm1236_vm3, %v3983_v10 }
 0x3a1   :  { %3404 = vmatprep.mubr.msk.f32.mxu1 %vm1236_vm3, %v3966_v3 }
 0x3a4   :  { %3405 = vmatmul.mubr.msk.f32.gmra.mxu1 %vm1236_vm3, %v3958_v0 }
 0x3a5   :  { %3407 = vmatprep.mubr.msk.f32.mxu1 %vm1236_vm3, %v3940_v56 }
 0x3a8   :  { %3408 = vmatmul.mubr.msk.f32.gmra.mxu1 %vm1236_vm3, %v3920_v48 }
 0x3a9   :  { %3410 = vmatprep.mubr.msk.f32.mxu1 %vm1236_vm3, %v3907_v42 }
 0x3ac   :  { %3411 = vmatmul.mubr.msk.f32.gmra.mxu1 %vm1236_vm3, %v3894_v37 }
 0x3ad   :  { %3413 = vmatprep.mubr.msk.f32.mxu1 %vm1236_vm3, %v3875_v30 }
 0x3b0   :  { %3414 = vmatmul.mubr.msk.f32.gmra.mxu1 %vm1236_vm3, %v4011_v32 }
 0x3b1   :  { %3416 = vmatprep.mubr.msk.f32.mxu1 %vm1236_vm3, %v5493_v19 }
 0x3b4   :  { %3417 = vmatmul.mubr.msk.f32.gmra.mxu1 %vm1236_vm3, %v5494_v17 }
 0x3b5   :  { %3419 = vmatprep.mubr.msk.f32.mxu1 %vm1236_vm3, %v5495_v22 }
 0x3b8   :  { %3420 = vmatmul.mubr.msk.f32.gmra.mxu1 %vm1236_vm3, %v5496_v60 }
 0x3b9   :  { %3422 = vmatprep.mubr.msk.f32.mxu1 %vm1236_vm3, %v5497_v36 }
 0x3bc   :  { %3423 = vmatmul.mubr.msk.f32.gmra.mxu1 %vm1236_vm3, %v5498_v4 }
 0x3bd   :  { %3425 = vmatprep.mubr.msk.f32.mxu1 %vm1236_vm3, %v5499_v21 }
 0x3c0   :  { %3426 = vmatmul.mubr.msk.f32.gmra.mxu1 %vm1236_vm3, %v5500_v47 }
 0x3c1   :  { %3428 = vmatprep.mubr.msk.f32.mxu1 %vm1236_vm3, %v5501_v51 }
 0x3c4   :  { %3429 = vmatmul.mubr.msk.f32.gmra.mxu1 %vm1236_vm3, %v5502_v63 }
 0x3c5   :  { %3431 = vmatprep.mubr.msk.f32.mxu1 %vm1236_vm3, %v5503_v53 }
 0x3c8   :  { %3432 = vmatmul.mubr.msk.f32.gmra.mxu1 %vm1236_vm3, %v5504_v8 }
 0x3c9   :  { %3434 = vmatprep.mubr.msk.f32.mxu1 %vm1236_vm3, %v5505_v26 }
 0x3cc   :  { %3435 = vmatmul.mubr.msk.f32.gmra.mxu1 %vm1236_vm3, %v5506_v18 }
 0x3cd   :  { %3437 = vmatprep.mubr.msk.f32.mxu1 %vm1236_vm3, %v5507_v15 }
 0x3d0   :  { %3438 = vmatmul.mubr.msk.f32.gmra.mxu1 %vm1236_vm3, %v5508_v62 }
 0x3d1   :  { %3487 = vmatprep.mubr.msk.f32.mxu1 %vm1236_vm3, %v5507_v15 }
 0x41e   :  { %v2079_v55 = vpop.xlane.xlu0 %2078 }
 0x41f   :  { %v2080_v58 = vadd.f32 1.0, %v2079_v55  ;;  %v2790_v31 = vsel %vm2789_vm5, %v2079_v55, %v4689_v14 }
 0x420   :  { %2791 = vst [vmem:[#allocation2] sm:$0xff] %v2790_v31  ;;  %v5510_v31 = vld [vmem:[#allocation46_spill] sm:$0xff] }
 0x421   :  { %3560 = vrcp.f32 %v2080_v58 }
 0x42e   :  { %v3561_v33 = vpop.eup %3560 }
 0x42f   :  { %v2082_v44 = vmul.f32 %v3561_v33, %v3227_v23 }
 0x431   :  { %3440 = vmatprep.subr.mxu0 %v2082_v44  ;;  %3490 = vmatprep.subr.mxu1 %v2082_v44 }
 0x432   :  { %3441 = vmatpush3.msra.mxu0 %v2082_v44  ;;  %3491 = vmatpush3.msra.mxu1 %v2082_v44 }
 0x433   :  { %3443 = vmatmul.mubr.msk.f32.vlgmr.msra.gmra.mxu0 %vm1236_vm3, %v4106_v61  ;;  %3488 = vmatmul.mubr.msk.f32.vlgmr.msra.gmra.mxu1 %vm1236_vm3, %v5508_v62  ;;  %v5511_v62 = vld [vmem:[#allocation47_spill] sm:$0xff] }
 0x434   :  { %3445 = vmatprep.mubr.msk.f32.mxu0 %vm1236_vm3, %v4084_v35 }
 0x437   :  { %3446 = vmatmul.mubr.msk.f32.gmra.mxu0 %vm1236_vm3, %v4066_v11 }
 0x438   :  { %3448 = vmatprep.mubr.msk.f32.mxu0 %vm1236_vm3, %v4048_v59 }
 0x43b   :  { %3449 = vmatmul.mubr.msk.f32.gmra.mxu0 %vm1236_vm3, %v4028_v43 }
 0x43c   :  { %3451 = vmatprep.mubr.msk.f32.mxu0 %vm1236_vm3, %v4007_v29 }
 0x43f   :  { %3452 = vmatmul.mubr.msk.f32.gmra.mxu0 %vm1236_vm3, %v3983_v10 }
 0x440   :  { %3454 = vmatprep.mubr.msk.f32.mxu0 %vm1236_vm3, %v3966_v3 }
 0x443   :  { %3455 = vmatmul.mubr.msk.f32.gmra.mxu0 %vm1236_vm3, %v3958_v0 }
 0x444   :  { %3457 = vmatprep.mubr.msk.f32.mxu0 %vm1236_vm3, %v3940_v56 }
 0x447   :  { %3458 = vmatmul.mubr.msk.f32.gmra.mxu0 %vm1236_vm3, %v3920_v48 }
 0x448   :  { %3460 = vmatprep.mubr.msk.f32.mxu0 %vm1236_vm3, %v3907_v42 }
 0x44b   :  { %3461 = vmatmul.mubr.msk.f32.gmra.mxu0 %vm1236_vm3, %v3894_v37 }
 0x44c   :  { %3463 = vmatprep.mubr.msk.f32.mxu0 %vm1236_vm3, %v3875_v30 }
 0x44f   :  { %3464 = vmatmul.mubr.msk.f32.gmra.mxu0 %vm1236_vm3, %v4011_v32 }
 0x450   :  { %3466 = vmatprep.mubr.msk.f32.mxu0 %vm1236_vm3, %v5493_v19 }
 0x453   :  { %3467 = vmatmul.mubr.msk.f32.gmra.mxu0 %vm1236_vm3, %v5494_v17  ;;  %v5512_v17 = vld [vmem:[#allocation48_spill] sm:$0xff] }
 0x454   :  { %v3394_v56 = vpop.f32.mrf.mxu1  ;;  %3469 = vmatprep.mubr.msk.f32.mxu0 %vm1236_vm3, %v5495_v22 }
 0x455   :  { %v2534_v42 = vmul.f32 %v3394_v56, %v4581_v24  ;;  %v5509_v24 = vld [vmem:[#allocation45_spill] sm:$0xff] }
 0x456   :  { %v2149_v48 = vpop.f32.mrf.mxu1 }
 0x457   :  { %v2533_v37 = vmul.f32 %v4596_v34, %v2149_v48  ;;  %3470 = vmatmul.mubr.msk.f32.gmra.mxu0 %vm1236_vm3, %v5496_v60  ;;  %v2568_v30 = vsel %vm758_vm8, %v2534_v42, 0.0 }
 0x458   :  { %v3397_v0 = vpop.f32.mrf.mxu1  ;;  %2569 = vadd.xlane.f32.xlu0 %v2568_v30  ;;  %3472 = vmatprep.mubr.msk.f32.mxu0 %vm1236_vm3, %v5497_v36 }
 0x459   :  { %v2536_v3 = vmul.f32 %v3397_v0, %v4549_v1  ;;  %v2565_v10 = vsel %vm758_vm8, %v2533_v37, 0.0  ;;  %v5515_v37 = vld [vmem:[#allocation24_spill] sm:$0xff] }
 0x45a   :  { %2566 = vadd.xlane.f32.xlu1 %v2565_v10  ;;  %v2159_v29 = vpop.f32.mrf.mxu1 }
 0x45b   :  { %v2535_v32 = vmul.f32 %v4566_v41, %v2159_v29  ;;  %3473 = vmatmul.mubr.msk.f32.gmra.mxu0 %vm1236_vm3, %v5498_v4  ;;  %v2574_v43 = vsel %vm758_vm8, %v2536_v3, 0.0  ;;  %v5513_v4 = vld [vmem:[#allocation49_spill] sm:$0xff] }
 0x45c   :  { %v3400_v59 = vpop.f32.mrf.mxu1  ;;  %2575 = vadd.xlane.f32.xlu0 %v2574_v43  ;;  %3475 = vmatprep.mubr.msk.f32.mxu0 %vm1236_vm3, %v5499_v21  ;;  %v5516_v3 = vld [vmem:[#allocation9_spill] sm:$0xff] }
 0x45d   :  { %v2538_v11 = vmul.f32 %v3400_v59, %v4508_v13  ;;  %v2571_v35 = vsel %vm758_vm8, %v2535_v32, 0.0 }
 0x45e   :  { %2572 = vadd.xlane.f32.xlu1 %v2571_v35  ;;  %v2169_v61 = vpop.f32.mrf.mxu1 }
 0x45f   :  { %v2537_v1 = vmul.f32 %v4531_v7, %v2169_v61  ;;  %3476 = vmatmul.mubr.msk.f32.gmra.mxu0 %vm1236_vm3, %v5500_v47  ;;  %v2580_v41 = vsel %vm758_vm8, %v2538_v11, 0.0 }
 0x460   :  { %v3403_v58 = vpop.f32.mrf.mxu1  ;;  %2581 = vadd.xlane.f32.xlu0 %v2580_v41  ;;  %3478 = vmatprep.mubr.msk.f32.mxu0 %vm1236_vm3, %v5501_v51 }
 0x461   :  { %v2540_v34 = vmul.f32 %v3403_v58, %v5509_v24  ;;  %v2577_v13 = vsel %vm758_vm8, %v2537_v1, 0.0 }
 0x462   :  { %2578 = vadd.xlane.f32.xlu1 %v2577_v13  ;;  %v2179_v27 = vpop.f32.mrf.mxu1 }
 0x463   :  { %v2539_v14 = vmul.f32 %v4491_v46, %v2179_v27  ;;  %3479 = vmatmul.mubr.msk.f32.gmra.mxu0 %vm1236_vm3, %v5502_v63  ;;  %v2586_v7 = vsel %vm758_vm8, %v2540_v34, 0.0  ;;  %v5514_v63 = vld [vmem:[#allocation50_spill] sm:$0xff] }
 0x464   :  { %v3406_v44 = vpop.f32.mrf.mxu1  ;;  %2587 = vadd.xlane.f32.xlu0 %v2586_v7  ;;  %3481 = vmatprep.mubr.msk.f32.mxu0 %vm1236_vm3, %v5503_v53 }
 0x465   :  { %v2542_v33 = vmul.f32 %v3406_v44, %v5510_v31  ;;  %v2583_v55 = vsel %vm758_vm8, %v2539_v14, 0.0  ;;  %v5517_v44 = vld [vmem:[#allocation10_spill] sm:$0xff] }
 0x466   :  { %2584 = vadd.xlane.f32.xlu1 %v2583_v55  ;;  %v2189_v15 = vpop.f32.mrf.mxu1 }
 0x467   :  { %v2541_v23 = vmul.f32 %v5511_v62, %v2189_v15  ;;  %3482 = vmatmul.mubr.msk.f32.gmra.mxu0 %vm1236_vm3, %v5504_v8  ;;  %v2592_v46 = vsel %vm758_vm8, %v2542_v33, 0.0  ;;  %v5518_v62 = vld [vmem:[#allocation26_spill] sm:$0xff] }
 0x468   :  { %v3409_v19 = vpop.f32.mrf.mxu1  ;;  %2593 = vadd.xlane.f32.xlu0 %v2592_v46  ;;  %3484 = vmatprep.mubr.msk.f32.mxu0 %vm1236_vm3, %v5505_v26 }
 0x469   :  { %v2544_v22 = vmul.f32 %v3409_v19, %v5512_v17  ;;  %v2589_v60 = vsel %vm758_vm8, %v2541_v23, 0.0  ;;  %v5519_v19 = vld [vmem:[#allocation27_spill] sm:$0xff] }
 0x46a   :  { %2590 = vadd.xlane.f32.xlu1 %v2589_v60  ;;  %v2199_v36 = vpop.f32.mrf.mxu1 }
 0x46b   :  { %v2543_v21 = vmul.f32 %v5513_v4, %v2199_v36  ;;  %3485 = vmatmul.mubr.msk.f32.gmra.mxu0 %vm1236_vm3, %v5506_v18  ;;  %v2598_v47 = vsel %vm758_vm8, %v2544_v22, 0.0  ;;  %v5520_v36 = vld [vmem:[#allocation12_spill] sm:$0xff] }
 0x46c   :  { %v3412_v51 = vpop.f32.mrf.mxu1  ;;  %2599 = vadd.xlane.f32.xlu0 %v2598_v47  ;;  %v5521_v47 = vld [vmem:[#allocation20_spill] sm:$0xff] }
 0x46d   :  { %v2546_v53 = vmul.f32 %v3412_v51, %v5514_v63  ;;  %v2595_v8 = vsel %vm758_vm8, %v2543_v21, 0.0 }
 0x46e   :  { %2596 = vadd.xlane.f32.xlu1 %v2595_v8  ;;  %v2209_v26 = vpop.f32.mrf.mxu1  ;;  %v5522_v8 = vld [vmem:[#allocation13_spill] sm:$0xff] }
 0x46f   :  { %v2545_v56 = vmul.f32 %v4449_v50, %v2209_v26  ;;  %v2604_v42 = vsel %vm758_vm8, %v2546_v53, 0.0 }
 0x470   :  { %v3415_v48 = vpop.f32.mrf.mxu1  ;;  %2605 = vadd.xlane.f32.xlu0 %v2604_v42 }
 0x471   :  { %v2548_v30 = vmul.f32 %v3415_v48, %v5515_v37  ;;  %v2601_v18 = vsel %vm758_vm8, %v2545_v56, 0.0  ;;  %v5523_v48 = vld [vmem:[#allocation22_spill] sm:$0xff] }
 0x472   :  { %2602 = vadd.xlane.f32.xlu1 %v2601_v18  ;;  %v2219_v0 = vpop.f32.mrf.mxu1 }
 0x473   :  { %v2547_v10 = vmul.f32 %v5516_v3, %v2219_v0  ;;  %v2610_v29 = vsel %vm758_vm8, %v2548_v30, 0.0  ;;  %v5524_v0 = vld [vmem:[#allocation15_spill] sm:$0xff] }
 0x474   :  { %v3418_v32 = vpop.f32.mrf.mxu1  ;;  %2611 = vadd.xlane.f32.xlu0 %v2610_v29 }
 0x475   :  { %v2550_v43 = vmul.f32 %v3418_v32, %v4656_v16  ;;  %v2607_v50 = vsel %vm758_vm8, %v2547_v10, 0.0  ;;  %v5525_v32 = vld [vmem:[#allocation16_spill] sm:$0xff] }
 0x476   :  { %2608 = vadd.xlane.f32.xlu1 %v2607_v50  ;;  %v2229_v59 = vpop.f32.mrf.mxu1 }
 0x477   :  { %v2549_v11 = vmul.f32 %v4663_v6, %v2229_v59  ;;  %v2616_v35 = vsel %vm758_vm8, %v2550_v43, 0.0 }
 0x478   :  { %v3421_v61 = vpop.f32.mrf.mxu1  ;;  %2617 = vadd.xlane.f32.xlu0 %v2616_v35 }
 0x479   :  { %v2552_v1 = vmul.f32 %v3421_v61, %v4641_v57  ;;  %v2613_v41 = vsel %vm758_vm8, %v2549_v11, 0.0 }
 0x47a   :  { %2614 = vadd.xlane.f32.xlu1 %v2613_v41  ;;  %v2239_v58 = vpop.f32.mrf.mxu1 }
 0x47b   :  { %v2551_v24 = vmul.f32 %v4649_v40, %v2239_v58  ;;  %v2622_v16 = vsel %vm758_vm8, %v2552_v1, 0.0 }
 0x47c   :  { %v3424_v34 = vpop.f32.mrf.mxu1  ;;  %2623 = vadd.xlane.f32.xlu0 %v2622_v16 }
 0x47d   :  { %v2554_v13 = vmul.f32 %v3424_v34, %v4625_v12  ;;  %v2619_v6 = vsel %vm758_vm8, %v2551_v24, 0.0 }
 0x47e   :  { %2620 = vadd.xlane.f32.xlu1 %v2619_v6  ;;  %v2249_v27 = vpop.f32.mrf.mxu1 }
 0x47f   :  { %v2553_v14 = vmul.f32 %v4633_v45, %v2249_v27  ;;  %v2628_v57 = vsel %vm758_vm8, %v2554_v13, 0.0 }
 0x480   :  { %v3427_v7 = vpop.f32.mrf.mxu1  ;;  %2629 = vadd.xlane.f32.xlu0 %v2628_v57 }
 0x481   :  { %v2556_v31 = vmul.f32 %v3427_v7, %v5517_v44  ;;  %v2625_v40 = vsel %vm758_vm8, %v2553_v14, 0.0 }
 0x482   :  { %2626 = vadd.xlane.f32.xlu1 %v2625_v40  ;;  %v2259_v33 = vpop.f32.mrf.mxu1 }
 0x483   :  { %v2555_v55 = vmul.f32 %v4617_v54, %v2259_v33  ;;  %v2634_v12 = vsel %vm758_vm8, %v2556_v31, 0.0 }
 0x484   :  { %v3430_v15 = vpop.f32.mrf.mxu1  ;;  %2635 = vadd.xlane.f32.xlu0 %v2634_v12 }
 0x485   :  { %v2558_v23 = vmul.f32 %v3430_v15, %v5518_v62  ;;  %v2631_v45 = vsel %vm758_vm8, %v2555_v55, 0.0 }
 0x486   :  { %2632 = vadd.xlane.f32.xlu1 %v2631_v45  ;;  %v2269_v46 = vpop.f32.mrf.mxu1 }
 0x487   :  { %v2557_v17 = vmul.f32 %v5519_v19, %v2269_v46  ;;  %v2640_v22 = vsel %vm758_vm8, %v2558_v23, 0.0 }
 0x488   :  { %v3433_v60 = vpop.f32.mrf.mxu1  ;;  %2641 = vadd.xlane.f32.xlu0 %v2640_v22 }
 0x489   :  { %v2560_v4 = vmul.f32 %v3433_v60, %v5520_v36  ;;  %v2637_v54 = vsel %vm758_vm8, %v2557_v17, 0.0 }
 0x48a   :  { %2638 = vadd.xlane.f32.xlu1 %v2637_v54  ;;  %v2279_v21 = vpop.f32.mrf.mxu1 }
 0x48b   :  { %v2559_v51 = vmul.f32 %v5521_v47, %v2279_v21  ;;  %v2646_v63 = vsel %vm758_vm8, %v2560_v4, 0.0 }
 0x48c   :  { %v3436_v53 = vpop.f32.mrf.mxu1  ;;  %2647 = vadd.xlane.f32.xlu0 %v2646_v63 }
 0x48d   :  { %v2562_v26 = vmul.f32 %v3436_v53, %v5522_v8  ;;  %v2643_v56 = vsel %vm758_vm8, %v2559_v51, 0.0 }
 0x48e   :  { %2644 = vadd.xlane.f32.xlu1 %v2643_v56  ;;  %v2289_v42 = vpop.f32.mrf.mxu1 }
 0x48f   :  { %v2561_v37 = vmul.f32 %v5523_v48, %v2289_v42  ;;  %v2652_v30 = vsel %vm758_vm8, %v2562_v26, 0.0 }
 0x490   :  { %v3439_v18 = vpop.f32.mrf.mxu1  ;;  %2653 = vadd.xlane.f32.xlu0 %v2652_v30 }
 0x491   :  { %v2564_v3 = vmul.f32 %v3439_v18, %v5524_v0  ;;  %v2649_v10 = vsel %vm758_vm8, %v2561_v37, 0.0 }
 0x492   :  { %2650 = vadd.xlane.f32.xlu1 %v2649_v10  ;;  %v2299_v29 = vpop.f32.mrf.mxu1 }
 0x493   :  { %v2563_v43 = vmul.f32 %v5525_v32, %v2299_v29  ;;  %v2658_v50 = vsel %vm758_vm8, %v2564_v3, 0.0 }
 0x494   :  { %2659 = vadd.xlane.f32.xlu0 %v2658_v50 }
 0x495   :  { %v2655_v59 = vsel %vm758_vm8, %v2563_v43, 0.0 }
 0x496   :  { %2656 = vadd.xlane.f32.xlu1 %v2655_v59 }
 0x497   :  { %3573 = shalt.err (!%p3570_p4)
}
 0x498   :  { %2801 = dma.vmem_to_hbm [thread:$0]  %s2799_s15, 128, %s5284_s8, [#allocation3]   ;;  %v2662_v13 = vmul.f32 0.99, %v4882_v5  ;;  %v2661_v57 = vmul.f32 0.99, %v4894_v20 }
 0x499   :  { %v2664_v33 = vmul.f32 0.99, %v4854_v52  ;;  %v2663_v62 = vmul.f32 0.99, %v4867_v2  ;;  %v2666_v46 = vmul.f32 0.99, %v4828_v49 }
 0x49a   :  { %v2665_v60 = vmul.f32 0.99, %v4841_v39  ;;  %v2668_v21 = vmul.f32 0.99, %v4800_v38  ;;  %v2667_v53 = vmul.f32 0.99, %v4816_v25 }
 0x49b   :  { %v2670_v42 = vmul.f32 0.99, %v4775_v28  ;;  %v2669_v18 = vmul.f32 0.99, %v4787_v9  ;;  %v5526_v29 = vld [vmem:[#allocation36_spill] sm:$0xff] }
 0x49c   :  { %v2672_v32 = vmul.f32 0.99, %v5526_v29 }
 0x4e1   :  { %v2570_v11 = vpop.xlane.xlu0 %2569 }
 0x4e3   :  { %v2567_v35 = vpop.xlane.xlu1 %2566 }
 0x4e5   :  { %v2576_v61 = vpop.xlane.xlu0 %2575 }
 0x4e7   :  { %v2573_v1 = vpop.xlane.xlu1 %2572 }
 0x4e9   :  { %v2582_v41 = vpop.xlane.xlu0 %2581 }
 0x4eb   :  { %v2579_v58 = vpop.xlane.xlu1 %2578 }
 0x4ed   :  { %v2588_v24 = vpop.xlane.xlu0 %2587 }
 0x4ef   :  { %v2585_v16 = vpop.xlane.xlu1 %2584 }
 0x4f1   :  { %v2594_v34 = vpop.xlane.xlu0 %2593 }
 0x4f3   :  { %v2591_v6 = vpop.xlane.xlu1 %2590  ;;  %v3444_v27 = vpop.f32.mrf.mxu0 }
 0x4f4   :  { %v2694_v14 = vmul.f32 %v3444_v27, %v2570_v11  ;;  %v5527_v11 = vld [vmem:[#allocation40_spill] sm:$0xff] }
 0x4f5   :  { %v2374_v7 = vpop.f32.mrf.mxu0  ;;  %v2600_v44 = vpop.xlane.xlu0 %2599 }
 0x4f6   :  { %v2726_v31 = vsub.f32 %v2662_v13, %v2694_v14  ;;  %v2693_v40 = vmul.f32 %v2567_v35, %v2374_v7  ;;  %v2671_v35 = vmul.f32 0.99, %v5527_v11  ;;  %v5529_v14 = vld [vmem:[#allocation32_spill] sm:$0xff]  ;;  %v5538_v11 = vld [vmem:[#allocation17_spill] sm:$0xff] }
 0x4f7   :  { %v2597_v55 = vpop.xlane.xlu1 %2596  ;;  %v3447_v12 = vpop.f32.mrf.mxu0 }
 0x4f8   :  { %2758 = vst.msk [vmem:[%s5285_s9 + $0x8] sm:$0xff] %vm758_vm8, %v2726_v31  ;;  %v2725_v15 = vsub.f32 %v2661_v57, %v2693_v40  ;;  %v2696_v5 = vmul.f32 %v3447_v12, %v2576_v61  ;;  %v2673_v57 = vmul.f32 0.99, %v5529_v14 }
 0x4f9   :  { %v2384_v23 = vpop.f32.mrf.mxu0  ;;  %v2606_v45 = vpop.xlane.xlu0 %2605 }
 0x4fa   :  { %2757 = vst.msk [vmem:[%s5285_s9] sm:$0xff] %vm758_vm8, %v2725_v15  ;;  %v2728_v20 = vsub.f32 %v2664_v33, %v2696_v5  ;;  %v2695_v52 = vmul.f32 %v2573_v1, %v2384_v23  ;;  %v5530_v33 = vld [vmem:[#allocation19_spill] sm:$0xff]  ;;  %v5531_v23 = vld [vmem:[#allocation6_spill] sm:$0xff] }
 0x4fb   :  { %v2603_v19 = vpop.xlane.xlu1 %2602  ;;  %v3450_v17 = vpop.f32.mrf.mxu0 }
 0x4fc   :  { %2760 = vst.msk [vmem:[%s5285_s9 + $0x18] sm:$0xff] %vm758_vm8, %v2728_v20  ;;  %v2727_v22 = vsub.f32 %v2663_v62, %v2695_v52  ;;  %v2698_v2 = vmul.f32 %v3450_v17, %v2582_v41  ;;  %v5532_v17 = vld [vmem:[#allocation58_spill] sm:$0xff] }
 0x4fd   :  { %v2394_v36 = vpop.f32.mrf.mxu0  ;;  %v2612_v4 = vpop.xlane.xlu0 %2611 }
 0x4fe   :  { %2759 = vst.msk [vmem:[%s5285_s9 + $0x10] sm:$0xff] %vm758_vm8, %v2727_v22  ;;  %v2730_v54 = vsub.f32 %v2666_v46, %v2698_v2  ;;  %v2697_v49 = vmul.f32 %v2579_v58, %v2394_v36  ;;  %v2678_v22 = vmul.f32 0.99, %v5532_v17  ;;  %v5543_v17 = vld [vmem:[#allocation51_spill] sm:$0xff] }
 0x4ff   :  { %v2609_v47 = vpop.xlane.xlu1 %2608  ;;  %v3453_v51 = vpop.f32.mrf.mxu0 }
 0x500   :  { %2762 = vst.msk [vmem:[%s5285_s9 + $0x28] sm:$0xff] %vm758_vm8, %v2730_v54  ;;  %v2729_v63 = vsub.f32 %v2665_v60, %v2697_v49  ;;  %v2700_v39 = vmul.f32 %v3453_v51, %v2588_v24  ;;  %v5528_v24 = vld [vmem:[#allocation25_spill] sm:$0xff]  ;;  %v5533_v54 = vld [vmem:[#allocation59_spill] sm:$0xff] }
 0x501   :  { %v2404_v8 = vpop.f32.mrf.mxu0  ;;  %v2618_v26 = vpop.xlane.xlu0 %2617  ;;  %v2677_v49 = vmul.f32 0.99, %v5533_v54 }
 0x502   :  { %2761 = vst.msk [vmem:[%s5285_s9 + $0x20] sm:$0xff] %vm758_vm8, %v2729_v63  ;;  %v2732_v56 = vsub.f32 %v2668_v21, %v2700_v39  ;;  %v2699_v38 = vmul.f32 %v2585_v16, %v2404_v8  ;;  %v2674_v16 = vmul.f32 0.99, %v5528_v24  ;;  %v5534_v39 = vld [vmem:[#allocation56_spill] sm:$0xff] }
 0x503   :  { %v2615_v48 = vpop.xlane.xlu1 %2614  ;;  %v3456_v37 = vpop.f32.mrf.mxu0  ;;  %v5539_v24 = vld [vmem:[#allocation52_spill] sm:$0xff] }
 0x504   :  { %2764 = vst.msk [vmem:[%s5285_s9 + $0x38] sm:$0xff] %vm758_vm8, %v2732_v56  ;;  %v2731_v30 = vsub.f32 %v2667_v53, %v2699_v38  ;;  %v2702_v25 = vmul.f32 %v3456_v37, %v2594_v34  ;;  %v2680_v53 = vmul.f32 0.99, %v5534_v39 }
 0x505   :  { %v2414_v0 = vpop.f32.mrf.mxu0  ;;  %v2624_v3 = vpop.xlane.xlu0 %2623 }
 0x506   :  { %2763 = vst.msk [vmem:[%s5285_s9 + $0x30] sm:$0xff] %vm758_vm8, %v2731_v30  ;;  %v2734_v10 = vsub.f32 %v2670_v42, %v2702_v25  ;;  %v2701_v28 = vmul.f32 %v2591_v6, %v2414_v0  ;;  %v5535_v42 = vld [vmem:[#allocation57_spill] sm:$0xff]  ;;  %v3489_v30 = vpop.f32.mrf.mxu1 }
 0x507   :  { %v2621_v43 = vpop.xlane.xlu1 %2620  ;;  %v3459_v50 = vpop.f32.mrf.mxu0  ;;  %v2679_v37 = vmul.f32 0.99, %v5535_v42 }
 0x508   :  { %2766 = vst.msk [vmem:[%s5285_s9 + $0x48] sm:$0xff] %vm758_vm8, %v2734_v10  ;;  %v2733_v59 = vsub.f32 %v2669_v18, %v2701_v28  ;;  %v2704_v9 = vmul.f32 %v3459_v50, %v2600_v44  ;;  %v5536_v10 = vld [vmem:[#allocation54_spill] sm:$0xff] }
 0x509   :  { %v2424_v61 = vpop.f32.mrf.mxu0  ;;  %v2630_v1 = vpop.xlane.xlu0 %2629  ;;  %v2682_v28 = vmul.f32 0.99, %v5536_v10 }
 0x50a   :  { %2765 = vst.msk [vmem:[%s5285_s9 + $0x40] sm:$0xff] %vm758_vm8, %v2733_v59  ;;  %v2736_v41 = vsub.f32 %v2672_v32, %v2704_v9  ;;  %v2703_v58 = vmul.f32 %v2597_v55, %v2424_v61  ;;  %v2676_v55 = vmul.f32 0.99, %v5530_v33  ;;  %v5537_v59 = vld [vmem:[#allocation55_spill] sm:$0xff]  ;;  %v2524_v61 = vpop.f32.mrf.mxu1 }
 0x50b   :  { %v2627_v34 = vpop.xlane.xlu1 %2626  ;;  %v3462_v13 = vpop.f32.mrf.mxu0  ;;  %v2681_v9 = vmul.f32 0.99, %v5537_v59 }
 0x50c   :  { %2768 = vst.msk [vmem:[%s5285_s9 + $0x58] sm:$0xff] %vm758_vm8, %v2736_v41  ;;  %v2735_v6 = vsub.f32 %v2671_v35, %v2703_v58  ;;  %v2706_v27 = vmul.f32 %v3462_v13, %v2606_v45  ;;  %v2675_v45 = vmul.f32 0.99, %v5531_v23  ;;  %v2692_v35 = vmul.f32 0.99, %v5538_v11 }
 0x50d   :  { %v2434_v7 = vpop.f32.mrf.mxu0  ;;  %v5156_v44 = vpop.xlane.xlu0 %2635 }
 0x50e   :  { %2767 = vst.msk [vmem:[%s5285_s9 + $0x50] sm:$0xff] %vm758_vm8, %v2735_v6  ;;  %v2738_v31 = vsub.f32 %v2674_v16, %v2706_v27  ;;  %v2705_v40 = vmul.f32 %v2603_v19, %v2434_v7  ;;  %v5540_v27 = vld [vmem:[#allocation11_spill] sm:$0xff]  ;;  %v5541_v7 = vld [vmem:[#allocation53_spill] sm:$0xff] }
 0x50f   :  { %v5163_v12 = vpop.xlane.xlu1 %2632  ;;  %v3465_v15 = vpop.f32.mrf.mxu0  ;;  %v2691_v14 = vmul.f32 0.99, %v5540_v27 }
 0x510   :  { %2770 = vst.msk [vmem:[%s5285_s9 + $0x68] sm:$0xff] %vm758_vm8, %v2738_v31  ;;  %v2737_v5 = vsub.f32 %v2673_v57, %v2705_v40  ;;  %v2708_v62 = vmul.f32 %v3465_v15, %v2612_v4  ;;  %v2683_v31 = vmul.f32 0.99, %v5541_v7 }
 0x511   :  { %v2444_v20 = vpop.f32.mrf.mxu0  ;;  %v5170_v52 = vpop.xlane.xlu0 %2641 }
 0x512   :  { %2769 = vst.msk [vmem:[%s5285_s9 + $0x60] sm:$0xff] %vm758_vm8, %v2737_v5  ;;  %v2740_v46 = vsub.f32 %v2676_v55, %v2708_v62  ;;  %v2707_v19 = vmul.f32 %v2609_v47, %v2444_v20 }
 0x513   :  { %v5177_v2 = vpop.xlane.xlu1 %2638  ;;  %v3468_v60 = vpop.f32.mrf.mxu0 }
 0x514   :  { %2772 = vst.msk [vmem:[%s5285_s9 + $0x78] sm:$0xff] %vm758_vm8, %v2740_v46  ;;  %v2739_v36 = vsub.f32 %v2675_v45, %v2707_v19  ;;  %v2710_v4 = vmul.f32 %v3468_v60, %v2618_v26  ;;  %v5542_v45 = vld [vmem:[#allocation5_spill] sm:$0xff] }
 0x515   :  { %v2454_v21 = vpop.f32.mrf.mxu0  ;;  %v5184_v51 = vpop.xlane.xlu0 %2647  ;;  %v2686_v20 = vmul.f32 0.99, %v5542_v45 }
 0x516   :  { %2771 = vst.msk [vmem:[%s5285_s9 + $0x70] sm:$0xff] %vm758_vm8, %v2739_v36  ;;  %v2742_v47 = vsub.f32 %v2678_v22, %v2710_v4  ;;  %v2709_v63 = vmul.f32 %v2615_v48, %v2454_v21  ;;  %v2685_v22 = vmul.f32 0.99, %v5543_v17  ;;  %v5544_v4 = vld [vmem:[#allocation34_spill] sm:$0xff] }
 0x517   :  { %v5191_v8 = vpop.xlane.xlu1 %2644  ;;  %v3471_v56 = vpop.f32.mrf.mxu0  ;;  %v2688_v54 = vmul.f32 0.99, %v5544_v4 }
 0x518   :  { %2774 = vst.msk [vmem:[%s5285_s9 + $0x88] sm:$0xff] %vm758_vm8, %v2742_v47  ;;  %v2741_v26 = vsub.f32 %v2677_v49, %v2709_v63  ;;  %v2712_v38 = vmul.f32 %v3471_v56, %v2624_v3  ;;  %v5545_v47 = vld [vmem:[#allocation38_spill] sm:$0xff]  ;;  %v5546_v56 = vld [vmem:[#allocation7_spill] sm:$0xff] }
 0x519   :  { %v2464_v25 = vpop.f32.mrf.mxu0  ;;  %v2654_v18 = vpop.xlane.xlu0 %2653  ;;  %v2687_v63 = vmul.f32 0.99, %v5545_v47 }
 0x51a   :  { %2773 = vst.msk [vmem:[%s5285_s9 + $0x80] sm:$0xff] %vm758_vm8, %v2741_v26  ;;  %v2744_v48 = vsub.f32 %v2680_v53, %v2712_v38  ;;  %v2711_v0 = vmul.f32 %v2621_v43, %v2464_v25  ;;  %v2684_v43 = vmul.f32 0.99, %v5539_v24  ;;  %v2690_v26 = vmul.f32 0.99, %v5546_v56 }
 0x51b   :  { %v2651_v29 = vpop.xlane.xlu1 %2650  ;;  %v3474_v32 = vpop.f32.mrf.mxu0 }
 0x51c   :  { %2776 = vst.msk [vmem:[%s5285_s9 + $0x98] sm:$0xff] %vm758_vm8, %v2744_v48  ;;  %v2743_v3 = vsub.f32 %v2679_v37, %v2711_v0  ;;  %v2714_v50 = vmul.f32 %v3474_v32, %v2630_v1  ;;  %v5547_v37 = vld [vmem:[#allocation28_spill] sm:$0xff] }
 0x51d   :  { %v2474_v41 = vpop.f32.mrf.mxu0  ;;  %v2660_v58 = vpop.xlane.xlu0 %2659 }
 0x51e   :  { %2775 = vst.msk [vmem:[%s5285_s9 + $0x90] sm:$0xff] %vm758_vm8, %v2743_v3  ;;  %v2746_v16 = vsub.f32 %v2682_v28, %v2714_v50  ;;  %v2713_v13 = vmul.f32 %v2627_v34, %v2474_v41  ;;  %v2724_v6 = vmul.f32 %v3489_v30, %v2660_v58  ;;  %v2689_v30 = vmul.f32 0.99, %v5547_v37 }
 0x51f   :  { %v2657_v1 = vpop.xlane.xlu1 %2656  ;;  %v3477_v57 = vpop.f32.mrf.mxu0 }
 0x520   :  { %2778 = vst.msk [vmem:[%s5285_s9 + $0xa8] sm:$0xff] %vm758_vm8, %v2746_v16  ;;  %v2745_v40 = vsub.f32 %v2681_v9, %v2713_v13  ;;  %v2756_v33 = vsub.f32 %v2692_v35, %v2724_v6  ;;  %v2716_v55 = vmul.f32 %v3477_v57, %v5156_v44  ;;  %v2723_v15 = vmul.f32 %v2657_v1, %v2524_v61 }
 0x521   :  { %v2484_v5 = vpop.f32.mrf.mxu0 }
 0x522   :  { %2777 = vst.msk [vmem:[%s5285_s9 + $0xa0] sm:$0xff] %vm758_vm8, %v2745_v40  ;;  %2788 = vst.msk [vmem:[%s5285_s9 + $0xf8] sm:$0xff] %vm758_vm8, %v2756_v33  ;;  %v2748_v34 = vsub.f32 %v2684_v43, %v2716_v55  ;;  %v2755_v62 = vsub.f32 %v2691_v14, %v2723_v15  ;;  %v2715_v23 = vmul.f32 %v5163_v12, %v2484_v5 }
 0x523   :  { %v3480_v46 = vpop.f32.mrf.mxu0 }
 0x524   :  { %2780 = vst.msk [vmem:[%s5285_s9 + $0xb8] sm:$0xff] %vm758_vm8, %v2748_v34  ;;  %2787 = vst.msk [vmem:[%s5285_s9 + $0xf0] sm:$0xff] %vm758_vm8, %v2755_v62  ;;  %v2747_v44 = vsub.f32 %v2683_v31, %v2715_v23  ;;  %v2718_v19 = vmul.f32 %v3480_v46, %v5170_v52 }
 0x525   :  { %v2494_v60 = vpop.f32.mrf.mxu0 }
 0x526   :  { %2779 = vst.msk [vmem:[%s5285_s9 + $0xb0] sm:$0xff] %vm758_vm8, %v2747_v44  ;;  %v2750_v12 = vsub.f32 %v2686_v20, %v2718_v19  ;;  %v2717_v36 = vmul.f32 %v5177_v2, %v2494_v60 }
 0x527   :  { %v3483_v49 = vpop.f32.mrf.mxu0 }
 0x528   :  { %2782 = vst.msk [vmem:[%s5285_s9 + $0xc8] sm:$0xff] %vm758_vm8, %v2750_v12  ;;  %v2749_v52 = vsub.f32 %v2685_v22, %v2717_v36  ;;  %v2720_v21 = vmul.f32 %v3483_v49, %v5184_v51 }
 0x529   :  { %v2504_v39 = vpop.f32.mrf.mxu0 }
 0x52a   :  { %2781 = vst.msk [vmem:[%s5285_s9 + $0xc0] sm:$0xff] %vm758_vm8, %v2749_v52  ;;  %v2752_v2 = vsub.f32 %v2688_v54, %v2720_v21  ;;  %v2719_v53 = vmul.f32 %v5191_v8, %v2504_v39 }
 0x52b   :  { %v3486_v38 = vpop.f32.mrf.mxu0 }
 0x52c   :  { %2784 = vst.msk [vmem:[%s5285_s9 + $0xd8] sm:$0xff] %vm758_vm8, %v2752_v2  ;;  %v2751_v51 = vsub.f32 %v2687_v63, %v2719_v53  ;;  %v2722_v42 = vmul.f32 %v3486_v38, %v2654_v18 }
 0x52d   :  { %v2514_v25 = vpop.f32.mrf.mxu0 }
 0x52e   :  { %2783 = vst.msk [vmem:[%s5285_s9 + $0xd0] sm:$0xff] %vm758_vm8, %v2751_v51  ;;  %v2754_v48 = vsub.f32 %v2690_v26, %v2722_v42  ;;  %v2721_v8 = vmul.f32 %v2651_v29, %v2514_v25 }
 0x530   :  { %2786 = vst.msk [vmem:[%s5285_s9 + $0xe8] sm:$0xff] %vm758_vm8, %v2754_v48  ;;  %v2753_v0 = vsub.f32 %v2689_v30, %v2721_v8 }
 0x532   :  { %2785 = vst.msk [vmem:[%s5285_s9 + $0xe0] sm:$0xff] %vm758_vm8, %v2753_v0 }
 0x533   :  { %3582 = dma.done.wait [#allocation3], 128  }
 0x534   :  { %3583 = vsyncadd [#allocation3], 4294967168 }
 0x535   :  { %2809 = vsyncpa [#allocation3], 1 }

</bundles_post_ra>
